<compile_context>
chip_gen: v6e
topology: v6e:2x2x1
jax: 0.10.0
libtpu: 0.0.40
codegen_flags: <defaults>
</compile_context>

<pallas_src>
import functools

import jax
import jax.numpy as jnp
from jax.experimental import pallas as pl
from jax.experimental.pallas import tpu as pltpu

K = 7           # kernel size
P = 3           # padding


def _spatial_attention_kernel(w_ref, x_ref, o_ref,
                              sum_sc, max_sc, pad_a, pad_m,
                              *, h_tile):
    # w_ref  : SMEM (2*K*K,)  flattened conv weight [avg-chan (pre-scaled 1/C) | max-chan]
    # x_ref  : VMEM (Ct,H,W)  one channel chunk of one batch element (unpadded)
    # o_ref  : VMEM (1,H,W)   output attention map for one batch element
    # sum_sc : VMEM (H,W)     running channel sum
    # max_sc : VMEM (H,W)     running channel max
    # pad_a/pad_m : VMEM (Hp,Wp) zero-padded reduced maps (conv input)
    ct, H, W = x_ref.shape

    c_idx = pl.program_id(1)
    nc = pl.num_programs(1)

    @pl.when(c_idx == 0)
    def _init():
        sum_sc[...] = jnp.zeros_like(sum_sc)
        max_sc[...] = jnp.full_like(max_sc, -jnp.inf)   # NOT 0: channels may be all-negative

    # Stream the chunk channel-by-channel; keeps the live set to ~3 tiles.
    def body(i, carry):
        s, m = carry
        xi = x_ref[i].astype(jnp.float32)
        return s + xi, jnp.maximum(m, xi)

    unroll = ct if ct <= 8 else 8
    s, m = jax.lax.fori_loop(0, ct, body, (sum_sc[...], max_sc[...]),
                             unroll=unroll)
    sum_sc[...] = s
    max_sc[...] = m

    @pl.when(c_idx == nc - 1)
    def _finalize():
        # Zero-padded conv inputs.  A padded border of 0 on the *reduced* maps is
        # exactly what PyTorch's conv padding (applied after the reduction) does.
        pad_a[...] = jnp.zeros_like(pad_a)
        pad_m[...] = jnp.zeros_like(pad_m)
        pad_a[P:P + H, P:P + W] = sum_sc[...]   # 1/C is folded into the avg weights
        pad_m[P:P + H, P:P + W] = max_sc[...]

        # 7x7 conv + sigmoid, tiled over output rows so acc stays small in vregs.
        for r0 in range(0, H, h_tile):
            ht = min(h_tile, H - r0)
            acc = jnp.zeros((ht, W), jnp.float32)
            for ki in range(K):
                # One band load per (map, ki); the kj taps below are register
                # lane-shifts of the loaded band (XLU), not fresh vector loads.
                a_band = pad_a[r0 + ki:r0 + ki + ht, :]
                m_band = pad_m[r0 + ki:r0 + ki + ht, :]
                for kj in range(K):
                    w_a = w_ref[ki * K + kj]
                    w_m = w_ref[K * K + ki * K + kj]
                    acc = acc + w_a * a_band[:, kj:kj + W] \
                              + w_m * m_band[:, kj:kj + W]
            o_ref[0, r0:r0 + ht, :] = jax.nn.sigmoid(acc).astype(o_ref.dtype)


def _pick_channel_chunk(C, H, W, budget_bytes=8 * 1024 * 1024):
    """Largest divisor of C whose double-buffered f32 input block fits the budget."""
    h_pad = -(-H // 8) * 8
    w_pad = -(-W // 128) * 128
    per_ch = h_pad * w_pad * 4
    max_ct = max(1, budget_bytes // (2 * per_ch))
    ct = 1
    for d in range(1, C + 1):
        if C % d == 0 and d <= max_ct:
            ct = d
    return ct


def spatial_attention(x, conv_weight):
    """x: (N,C,H,W) float32; conv_weight: (1,2,K,K) float32 -> (N,1,H,W)."""
    N, C, H, W = x.shape
    ct = _pick_channel_chunk(C, H, W)
    h_tile = H if H <= 64 else 64

    w = conv_weight.astype(jnp.float32)
    # Fold the 1/C of the channel mean into the avg-channel taps (so the kernel
    # only needs the channel *sum*).
    w_flat = jnp.concatenate([(w[0, 0] / C).reshape(-1), w[0, 1].reshape(-1)])

    kernel = functools.partial(_spatial_attention_kernel, h_tile=h_tile)

    return pl.pallas_call(
        kernel,
        out_shape=jax.ShapeDtypeStruct((N, 1, H, W), x.dtype),
        grid_spec=pltpu.PrefetchScalarGridSpec(
            num_scalar_prefetch=0,
            grid=(N, C // ct),                                        # c = reduction, last
            in_specs=[
                pl.BlockSpec(memory_space=pltpu.MemorySpace.SMEM),    # weights
                pl.BlockSpec((None, ct, H, W), lambda n, c: (n, c, 0, 0)),
            ],
            out_specs=pl.BlockSpec((None, 1, H, W), lambda n, c: (n, 0, 0, 0)),
            scratch_shapes=[
                pltpu.VMEM((H, W), jnp.float32),                      # running sum
                pltpu.VMEM((H, W), jnp.float32),                      # running max
                pltpu.VMEM((H + 2 * P, W + 2 * P), jnp.float32),      # padded avg map
                pltpu.VMEM((H + 2 * P, W + 2 * P), jnp.float32),      # padded max map
            ],
        ),
        compiler_params=pltpu.CompilerParams(
            dimension_semantics=("parallel", "arbitrary"),
        ),
    )(w_flat, x)


def _reference(x, conv_weight):
    avg = jnp.mean(x, axis=1, keepdims=True)
    mx = jnp.max(x, axis=1, keepdims=True)
    cat = jnp.concatenate([avg, mx], axis=1)
    y = jax.lax.conv_general_dilated(
        cat, conv_weight, window_strides=(1, 1), padding=((P, P), (P, P)),
        dimension_numbers=("NCHW", "OIHW", "NCHW"))
    return jax.nn.sigmoid(y)


if __name__ == "__main__":
    key = jax.random.PRNGKey(0)
    kx, kw = jax.random.split(key)

    N, C, H, W = 2, 4, 16, 16
    x = jax.random.normal(kx, (N, C, H, W), dtype=jnp.float32)

    # Deterministic init mimicking nn.Conv2d default (kaiming-uniform bound).
    fan_in = 2 * K * K
    bound = 1.0 / jnp.sqrt(fan_in)
    conv_weight = jax.random.uniform(kw, (1, 2, K, K), minval=-bound, maxval=bound,
                                     dtype=jnp.float32)

    out = spatial_attention(x, conv_weight)
    out = jax.block_until_ready(out)

    ref = _reference(x, conv_weight)
    assert out.shape == (N, 1, H, W), out.shape
    assert jnp.allclose(out, ref, atol=1e-5, rtol=1e-5), float(jnp.abs(out - ref).max())

    print("KERNEL_OK")
</pallas_src>

<mosaic_0001>
module attributes {stable_mosaic.version = 11 : i64} {
  func.func @_spatial_attention_kernel(%arg0: i32, %arg1: i32, %arg2: memref<98xf32, #tpu.memory_space<smem>>, %arg3: memref<1x4x16x16xf32, #tpu.memory_space<vmem>>, %arg4: memref<1x1x16x16xf32, #tpu.memory_space<vmem>>, %arg5: memref<16x16xf32, #tpu.memory_space<vmem>>, %arg6: memref<16x16xf32, #tpu.memory_space<vmem>>, %arg7: memref<22x22xf32, #tpu.memory_space<vmem>>, %arg8: memref<22x22xf32, #tpu.memory_space<vmem>>) attributes {dimension_semantics = [#tpu.dimension_semantics<parallel>, #tpu.dimension_semantics<arbitrary>], iteration_bounds = array<i64: 2, 1>, scalar_prefetch = 0 : i64, scratch_operands = 4 : i64, tpu.core_type = #tpu.core_type<tc>, window_params = [{transform_indices = @transform_0, window_bounds = array<i64: 98>}, {transform_indices = @transform_1, window_bounds = array<i64: 1, 4, 16, 16>}, {transform_indices = @transform_2, window_bounds = array<i64: 1, 1, 16, 16>}]} {
    %c0_i32 = arith.constant 0 : i32
    %0 = arith.cmpi eq, %arg1, %c0_i32 : i32
    %1 = arith.extui %0 : i1 to i32
    %c0_i32_0 = arith.constant 0 : i32
    %2 = arith.cmpi ne, %1, %c0_i32_0 : i32
    scf.if %2 {
      %cst = arith.constant 0.000000e+00 : f32
      %30 = vector.broadcast %cst : f32 to vector<16x16xf32>
      %c0_23 = arith.constant 0 : index
      %c0_24 = arith.constant 0 : index
      %31 = vector.load %arg5[%c0_23, %c0_24] : memref<16x16xf32, #tpu.memory_space<vmem>>, vector<16x16xf32>
      tpu.vector_store %arg5[%c0_23, %c0_24], %30 {strides = array<i32>} : memref<16x16xf32, #tpu.memory_space<vmem>>, vector<16x16xf32>,
      %cst_25 = arith.constant 0xFF800000 : f32
      %32 = vector.broadcast %cst_25 : f32 to vector<16x16xf32>
      %c0_26 = arith.constant 0 : index
      %c0_27 = arith.constant 0 : index
      %33 = vector.load %arg6[%c0_26, %c0_27] : memref<16x16xf32, #tpu.memory_space<vmem>>, vector<16x16xf32>
      tpu.vector_store %arg6[%c0_26, %c0_27], %32 {strides = array<i32>} : memref<16x16xf32, #tpu.memory_space<vmem>>, vector<16x16xf32>,
    } else {
    }
    %c0 = arith.constant 0 : index
    %c0_1 = arith.constant 0 : index
    %3 = vector.load %arg5[%c0, %c0_1] : memref<16x16xf32, #tpu.memory_space<vmem>>, vector<16x16xf32>
    %c0_2 = arith.constant 0 : index
    %c0_3 = arith.constant 0 : index
    %4 = vector.load %arg6[%c0_2, %c0_3] : memref<16x16xf32, #tpu.memory_space<vmem>>, vector<16x16xf32>
    %c0_i32_4 = arith.constant 0 : i32
    %c0_5 = arith.constant 0 : index
    %5 = arith.index_cast %c0_i32_4 : i32 to index
    %c0_6 = arith.constant 0 : index
    %c0_7 = arith.constant 0 : index
    %6 = vector.load %arg3[%c0_5, %5, %c0_6, %c0_7] : memref<1x4x16x16xf32, #tpu.memory_space<vmem>>, vector<1x1x16x16xf32>
    %7 = vector.shape_cast %6 : vector<1x1x16x16xf32> to vector<16x16xf32>
    %8 = arith.addf %3, %7 : vector<16x16xf32>
    %9 = arith.maximumf %4, %7 : vector<16x16xf32>
    %c1_i32 = arith.constant 1 : i32
    %c0_8 = arith.constant 0 : index
    %10 = arith.index_cast %c1_i32 : i32 to index
    %c0_9 = arith.constant 0 : index
    %c0_10 = arith.constant 0 : index
    %11 = vector.load %arg3[%c0_8, %10, %c0_9, %c0_10] : memref<1x4x16x16xf32, #tpu.memory_space<vmem>>, vector<1x1x16x16xf32>
    %12 = vector.shape_cast %11 : vector<1x1x16x16xf32> to vector<16x16xf32>
    %13 = arith.addf %8, %12 : vector<16x16xf32>
    %14 = arith.maximumf %9, %12 : vector<16x16xf32>
    %c2_i32 = arith.constant 2 : i32
    %c0_11 = arith.constant 0 : index
    %15 = arith.index_cast %c2_i32 : i32 to index
    %c0_12 = arith.constant 0 : index
    %c0_13 = arith.constant 0 : index
    %16 = vector.load %arg3[%c0_11, %15, %c0_12, %c0_13] : memref<1x4x16x16xf32, #tpu.memory_space<vmem>>, vector<1x1x16x16xf32>
    %17 = vector.shape_cast %16 : vector<1x1x16x16xf32> to vector<16x16xf32>
    %18 = arith.addf %13, %17 : vector<16x16xf32>
    %19 = arith.maximumf %14, %17 : vector<16x16xf32>
    %c3_i32 = arith.constant 3 : i32
    %c0_14 = arith.constant 0 : index
    %20 = arith.index_cast %c3_i32 : i32 to index
    %c0_15 = arith.constant 0 : index
    %c0_16 = arith.constant 0 : index
    %21 = vector.load %arg3[%c0_14, %20, %c0_15, %c0_16] : memref<1x4x16x16xf32, #tpu.memory_space<vmem>>, vector<1x1x16x16xf32>
    %22 = vector.shape_cast %21 : vector<1x1x16x16xf32> to vector<16x16xf32>
    %23 = arith.addf %18, %22 : vector<16x16xf32>
    %24 = arith.maximumf %19, %22 : vector<16x16xf32>
    %c4_i32 = arith.constant 4 : i32
    %c0_17 = arith.constant 0 : index
    %c0_18 = arith.constant 0 : index
    %25 = vector.load %arg5[%c0_17, %c0_18] : memref<16x16xf32, #tpu.memory_space<vmem>>, vector<16x16xf32>
    tpu.vector_store %arg5[%c0_17, %c0_18], %23 {strides = array<i32>} : memref<16x16xf32, #tpu.memory_space<vmem>>, vector<16x16xf32>,
    %c0_19 = arith.constant 0 : index
    %c0_20 = arith.constant 0 : index
    %26 = vector.load %arg6[%c0_19, %c0_20] : memref<16x16xf32, #tpu.memory_space<vmem>>, vector<16x16xf32>
    tpu.vector_store %arg6[%c0_19, %c0_20], %24 {strides = array<i32>} : memref<16x16xf32, #tpu.memory_space<vmem>>, vector<16x16xf32>,
    %c0_i32_21 = arith.constant 0 : i32
    %27 = arith.cmpi eq, %arg1, %c0_i32_21 : i32
    %28 = arith.extui %27 : i1 to i32
    %c0_i32_22 = arith.constant 0 : i32
    %29 = arith.cmpi ne, %28, %c0_i32_22 : i32
    scf.if %29 {
      %cst = arith.constant 0.000000e+00 : f32
      %30 = vector.broadcast %cst : f32 to vector<22x22xf32>
      %c0_23 = arith.constant 0 : index
      %c0_24 = arith.constant 0 : index
      %31 = vector.load %arg7[%c0_23, %c0_24] : memref<22x22xf32, #tpu.memory_space<vmem>>, vector<22x22xf32>
      tpu.vector_store %arg7[%c0_23, %c0_24], %30 {strides = array<i32>} : memref<22x22xf32, #tpu.memory_space<vmem>>, vector<22x22xf32>,
      %cst_25 = arith.constant 0.000000e+00 : f32
      %32 = vector.broadcast %cst_25 : f32 to vector<22x22xf32>
      %c0_26 = arith.constant 0 : index
      %c0_27 = arith.constant 0 : index
      %33 = vector.load %arg8[%c0_26, %c0_27] : memref<22x22xf32, #tpu.memory_space<vmem>>, vector<22x22xf32>
      tpu.vector_store %arg8[%c0_26, %c0_27], %32 {strides = array<i32>} : memref<22x22xf32, #tpu.memory_space<vmem>>, vector<22x22xf32>,
      %c0_28 = arith.constant 0 : index
      %c0_29 = arith.constant 0 : index
      %34 = vector.load %arg5[%c0_28, %c0_29] : memref<16x16xf32, #tpu.memory_space<vmem>>, vector<16x16xf32>
      %c3 = arith.constant 3 : index
      %c3_30 = arith.constant 3 : index
      %35 = vector.load %arg7[%c3, %c3_30] : memref<22x22xf32, #tpu.memory_space<vmem>>, vector<16x16xf32>
      tpu.vector_store %arg7[%c3, %c3_30], %34 {strides = array<i32>} : memref<22x22xf32, #tpu.memory_space<vmem>>, vector<16x16xf32>,
      %c0_31 = arith.constant 0 : index
      %c0_32 = arith.constant 0 : index
      %36 = vector.load %arg6[%c0_31, %c0_32] : memref<16x16xf32, #tpu.memory_space<vmem>>, vector<16x16xf32>
      %c3_33 = arith.constant 3 : index
      %c3_34 = arith.constant 3 : index
      %37 = vector.load %arg8[%c3_33, %c3_34] : memref<22x22xf32, #tpu.memory_space<vmem>>, vector<16x16xf32>
      tpu.vector_store %arg8[%c3_33, %c3_34], %36 {strides = array<i32>} : memref<22x22xf32, #tpu.memory_space<vmem>>, vector<16x16xf32>,
      %cst_35 = arith.constant 0.000000e+00 : f32
      %38 = vector.broadcast %cst_35 : f32 to vector<16x16xf32>
      %c0_36 = arith.constant 0 : index
      %c0_37 = arith.constant 0 : index
      %39 = vector.load %arg7[%c0_36, %c0_37] : memref<22x22xf32, #tpu.memory_space<vmem>>, vector<16x22xf32>
      %c0_38 = arith.constant 0 : index
      %c0_39 = arith.constant 0 : index
      %40 = vector.load %arg8[%c0_38, %c0_39] : memref<22x22xf32, #tpu.memory_space<vmem>>, vector<16x22xf32>
      %c0_40 = arith.constant 0 : index
      %41 = memref.load %arg2[%c0_40] : memref<98xf32, #tpu.memory_space<smem>>
      %c49 = arith.constant 49 : index
      %42 = memref.load %arg2[%c49] : memref<98xf32, #tpu.memory_space<smem>>
      %43 = vector.extract_strided_slice %39 {offsets = [0, 0], sizes = [16, 16], strides = [1, 1]} : vector<16x22xf32> to vector<16x16xf32>
      %44 = vector.broadcast %41 : f32 to vector<16x16xf32>
      %45 = arith.mulf %44, %43 : vector<16x16xf32>
      %46 = arith.addf %38, %45 : vector<16x16xf32>
      %47 = vector.extract_strided_slice %40 {offsets = [0, 0], sizes = [16, 16], strides = [1, 1]} : vector<16x22xf32> to vector<16x16xf32>
      %48 = vector.broadcast %42 : f32 to vector<16x16xf32>
      %49 = arith.mulf %48, %47 : vector<16x16xf32>
      %50 = arith.addf %46, %49 : vector<16x16xf32>
      %c1 = arith.constant 1 : index
      %51 = memref.load %arg2[%c1] : memref<98xf32, #tpu.memory_space<smem>>
      %c50 = arith.constant 50 : index
      %52 = memref.load %arg2[%c50] : memref<98xf32, #tpu.memory_space<smem>>
      %53 = vector.extract_strided_slice %39 {offsets = [0, 1], sizes = [16, 16], strides = [1, 1]} : vector<16x22xf32> to vector<16x16xf32>
      %54 = vector.broadcast %51 : f32 to vector<16x16xf32>
      %55 = arith.mulf %54, %53 : vector<16x16xf32>
      %56 = arith.addf %50, %55 : vector<16x16xf32>
      %57 = vector.extract_strided_slice %40 {offsets = [0, 1], sizes = [16, 16], strides = [1, 1]} : vector<16x22xf32> to vector<16x16xf32>
      %58 = vector.broadcast %52 : f32 to vector<16x16xf32>
      %59 = arith.mulf %58, %57 : vector<16x16xf32>
      %60 = arith.addf %56, %59 : vector<16x16xf32>
      %c2 = arith.constant 2 : index
      %61 = memref.load %arg2[%c2] : memref<98xf32, #tpu.memory_space<smem>>
      %c51 = arith.constant 51 : index
      %62 = memref.load %arg2[%c51] : memref<98xf32, #tpu.memory_space<smem>>
      %63 = vector.extract_strided_slice %39 {offsets = [0, 2], sizes = [16, 16], strides = [1, 1]} : vector<16x22xf32> to vector<16x16xf32>
      %64 = vector.broadcast %61 : f32 to vector<16x16xf32>
      %65 = arith.mulf %64, %63 : vector<16x16xf32>
      %66 = arith.addf %60, %65 : vector<16x16xf32>
      %67 = vector.extract_strided_slice %40 {offsets = [0, 2], sizes = [16, 16], strides = [1, 1]} : vector<16x22xf32> to vector<16x16xf32>
      %68 = vector.broadcast %62 : f32 to vector<16x16xf32>
      %69 = arith.mulf %68, %67 : vector<16x16xf32>
      %70 = arith.addf %66, %69 : vector<16x16xf32>
      %c3_41 = arith.constant 3 : index
      %71 = memref.load %arg2[%c3_41] : memref<98xf32, #tpu.memory_space<smem>>
      %c52 = arith.constant 52 : index
      %72 = memref.load %arg2[%c52] : memref<98xf32, #tpu.memory_space<smem>>
      %73 = vector.extract_strided_slice %39 {offsets = [0, 3], sizes = [16, 16], strides = [1, 1]} : vector<16x22xf32> to vector<16x16xf32>
      %74 = vector.broadcast %71 : f32 to vector<16x16xf32>
      %75 = arith.mulf %74, %73 : vector<16x16xf32>
      %76 = arith.addf %70, %75 : vector<16x16xf32>
      %77 = vector.extract_strided_slice %40 {offsets = [0, 3], sizes = [16, 16], strides = [1, 1]} : vector<16x22xf32> to vector<16x16xf32>
      %78 = vector.broadcast %72 : f32 to vector<16x16xf32>
      %79 = arith.mulf %78, %77 : vector<16x16xf32>
      %80 = arith.addf %76, %79 : vector<16x16xf32>
      %c4 = arith.constant 4 : index
      %81 = memref.load %arg2[%c4] : memref<98xf32, #tpu.memory_space<smem>>
      %c53 = arith.constant 53 : index
      %82 = memref.load %arg2[%c53] : memref<98xf32, #tpu.memory_space<smem>>
      %83 = vector.extract_strided_slice %39 {offsets = [0, 4], sizes = [16, 16], strides = [1, 1]} : vector<16x22xf32> to vector<16x16xf32>
      %84 = vector.broadcast %81 : f32 to vector<16x16xf32>
      %85 = arith.mulf %84, %83 : vector<16x16xf32>
      %86 = arith.addf %80, %85 : vector<16x16xf32>
      %87 = vector.extract_strided_slice %40 {offsets = [0, 4], sizes = [16, 16], strides = [1, 1]} : vector<16x22xf32> to vector<16x16xf32>
      %88 = vector.broadcast %82 : f32 to vector<16x16xf32>
      %89 = arith.mulf %88, %87 : vector<16x16xf32>
      %90 = arith.addf %86, %89 : vector<16x16xf32>
      %c5 = arith.constant 5 : index
      %91 = memref.load %arg2[%c5] : memref<98xf32, #tpu.memory_space<smem>>
      %c54 = arith.constant 54 : index
      %92 = memref.load %arg2[%c54] : memref<98xf32, #tpu.memory_space<smem>>
      %93 = vector.extract_strided_slice %39 {offsets = [0, 5], sizes = [16, 16], strides = [1, 1]} : vector<16x22xf32> to vector<16x16xf32>
      %94 = vector.broadcast %91 : f32 to vector<16x16xf32>
      %95 = arith.mulf %94, %93 : vector<16x16xf32>
      %96 = arith.addf %90, %95 : vector<16x16xf32>
      %97 = vector.extract_strided_slice %40 {offsets = [0, 5], sizes = [16, 16], strides = [1, 1]} : vector<16x22xf32> to vector<16x16xf32>
      %98 = vector.broadcast %92 : f32 to vector<16x16xf32>
      %99 = arith.mulf %98, %97 : vector<16x16xf32>
      %100 = arith.addf %96, %99 : vector<16x16xf32>
      %c6 = arith.constant 6 : index
      %101 = memref.load %arg2[%c6] : memref<98xf32, #tpu.memory_space<smem>>
      %c55 = arith.constant 55 : index
      %102 = memref.load %arg2[%c55] : memref<98xf32, #tpu.memory_space<smem>>
      %103 = vector.extract_strided_slice %39 {offsets = [0, 6], sizes = [16, 16], strides = [1, 1]} : vector<16x22xf32> to vector<16x16xf32>
      %104 = vector.broadcast %101 : f32 to vector<16x16xf32>
      %105 = arith.mulf %104, %103 : vector<16x16xf32>
      %106 = arith.addf %100, %105 : vector<16x16xf32>
      %107 = vector.extract_strided_slice %40 {offsets = [0, 6], sizes = [16, 16], strides = [1, 1]} : vector<16x22xf32> to vector<16x16xf32>
      %108 = vector.broadcast %102 : f32 to vector<16x16xf32>
      %109 = arith.mulf %108, %107 : vector<16x16xf32>
      %110 = arith.addf %106, %109 : vector<16x16xf32>
      %c1_42 = arith.constant 1 : index
      %c0_43 = arith.constant 0 : index
      %111 = vector.load %arg7[%c1_42, %c0_43] : memref<22x22xf32, #tpu.memory_space<vmem>>, vector<16x22xf32>
      %c1_44 = arith.constant 1 : index
      %c0_45 = arith.constant 0 : index
      %112 = vector.load %arg8[%c1_44, %c0_45] : memref<22x22xf32, #tpu.memory_space<vmem>>, vector<16x22xf32>
      %c7 = arith.constant 7 : index
      %113 = memref.load %arg2[%c7] : memref<98xf32, #tpu.memory_space<smem>>
      %c56 = arith.constant 56 : index
      %114 = memref.load %arg2[%c56] : memref<98xf32, #tpu.memory_space<smem>>
      %115 = vector.extract_strided_slice %111 {offsets = [0, 0], sizes = [16, 16], strides = [1, 1]} : vector<16x22xf32> to vector<16x16xf32>
      %116 = vector.broadcast %113 : f32 to vector<16x16xf32>
      %117 = arith.mulf %116, %115 : vector<16x16xf32>
      %118 = arith.addf %110, %117 : vector<16x16xf32>
      %119 = vector.extract_strided_slice %112 {offsets = [0, 0], sizes = [16, 16], strides = [1, 1]} : vector<16x22xf32> to vector<16x16xf32>
      %120 = vector.broadcast %114 : f32 to vector<16x16xf32>
      %121 = arith.mulf %120, %119 : vector<16x16xf32>
      %122 = arith.addf %118, %121 : vector<16x16xf32>
      %c8 = arith.constant 8 : index
      %123 = memref.load %arg2[%c8] : memref<98xf32, #tpu.memory_space<smem>>
      %c57 = arith.constant 57 : index
      %124 = memref.load %arg2[%c57] : memref<98xf32, #tpu.memory_space<smem>>
      %125 = vector.extract_strided_slice %111 {offsets = [0, 1], sizes = [16, 16], strides = [1, 1]} : vector<16x22xf32> to vector<16x16xf32>
      %126 = vector.broadcast %123 : f32 to vector<16x16xf32>
      %127 = arith.mulf %126, %125 : vector<16x16xf32>
      %128 = arith.addf %122, %127 : vector<16x16xf32>
      %129 = vector.extract_strided_slice %112 {offsets = [0, 1], sizes = [16, 16], strides = [1, 1]} : vector<16x22xf32> to vector<16x16xf32>
      %130 = vector.broadcast %124 : f32 to vector<16x16xf32>
      %131 = arith.mulf %130, %129 : vector<16x16xf32>
      %132 = arith.addf %128, %131 : vector<16x16xf32>
      %c9 = arith.constant 9 : index
      %133 = memref.load %arg2[%c9] : memref<98xf32, #tpu.memory_space<smem>>
      %c58 = arith.constant 58 : index
      %134 = memref.load %arg2[%c58] : memref<98xf32, #tpu.memory_space<smem>>
      %135 = vector.extract_strided_slice %111 {offsets = [0, 2], sizes = [16, 16], strides = [1, 1]} : vector<16x22xf32> to vector<16x16xf32>
      %136 = vector.broadcast %133 : f32 to vector<16x16xf32>
      %137 = arith.mulf %136, %135 : vector<16x16xf32>
      %138 = arith.addf %132, %137 : vector<16x16xf32>
      %139 = vector.extract_strided_slice %112 {offsets = [0, 2], sizes = [16, 16], strides = [1, 1]} : vector<16x22xf32> to vector<16x16xf32>
      %140 = vector.broadcast %134 : f32 to vector<16x16xf32>
      %141 = arith.mulf %140, %139 : vector<16x16xf32>
      %142 = arith.addf %138, %141 : vector<16x16xf32>
      %c10 = arith.constant 10 : index
      %143 = memref.load %arg2[%c10] : memref<98xf32, #tpu.memory_space<smem>>
      %c59 = arith.constant 59 : index
      %144 = memref.load %arg2[%c59] : memref<98xf32, #tpu.memory_space<smem>>
      %145 = vector.extract_strided_slice %111 {offsets = [0, 3], sizes = [16, 16], strides = [1, 1]} : vector<16x22xf32> to vector<16x16xf32>
      %146 = vector.broadcast %143 : f32 to vector<16x16xf32>
      %147 = arith.mulf %146, %145 : vector<16x16xf32>
      %148 = arith.addf %142, %147 : vector<16x16xf32>
      %149 = vector.extract_strided_slice %112 {offsets = [0, 3], sizes = [16, 16], strides = [1, 1]} : vector<16x22xf32> to vector<16x16xf32>
      %150 = vector.broadcast %144 : f32 to vector<16x16xf32>
      %151 = arith.mulf %150, %149 : vector<16x16xf32>
      %152 = arith.addf %148, %151 : vector<16x16xf32>
      %c11 = arith.constant 11 : index
      %153 = memref.load %arg2[%c11] : memref<98xf32, #tpu.memory_space<smem>>
      %c60 = arith.constant 60 : index
      %154 = memref.load %arg2[%c60] : memref<98xf32, #tpu.memory_space<smem>>
      %155 = vector.extract_strided_slice %111 {offsets = [0, 4], sizes = [16, 16], strides = [1, 1]} : vector<16x22xf32> to vector<16x16xf32>
      %156 = vector.broadcast %153 : f32 to vector<16x16xf32>
      %157 = arith.mulf %156, %155 : vector<16x16xf32>
      %158 = arith.addf %152, %157 : vector<16x16xf32>
      %159 = vector.extract_strided_slice %112 {offsets = [0, 4], sizes = [16, 16], strides = [1, 1]} : vector<16x22xf32> to vector<16x16xf32>
      %160 = vector.broadcast %154 : f32 to vector<16x16xf32>
      %161 = arith.mulf %160, %159 : vector<16x16xf32>
      %162 = arith.addf %158, %161 : vector<16x16xf32>
      %c12 = arith.constant 12 : index
      %163 = memref.load %arg2[%c12] : memref<98xf32, #tpu.memory_space<smem>>
      %c61 = arith.constant 61 : index
      %164 = memref.load %arg2[%c61] : memref<98xf32, #tpu.memory_space<smem>>
      %165 = vector.extract_strided_slice %111 {offsets = [0, 5], sizes = [16, 16], strides = [1, 1]} : vector<16x22xf32> to vector<16x16xf32>
      %166 = vector.broadcast %163 : f32 to vector<16x16xf32>
      %167 = arith.mulf %166, %165 : vector<16x16xf32>
      %168 = arith.addf %162, %167 : vector<16x16xf32>
      %169 = vector.extract_strided_slice %112 {offsets = [0, 5], sizes = [16, 16], strides = [1, 1]} : vector<16x22xf32> to vector<16x16xf32>
      %170 = vector.broadcast %164 : f32 to vector<16x16xf32>
      %171 = arith.mulf %170, %169 : vector<16x16xf32>
      %172 = arith.addf %168, %171 : vector<16x16xf32>
      %c13 = arith.constant 13 : index
      %173 = memref.load %arg2[%c13] : memref<98xf32, #tpu.memory_space<smem>>
      %c62 = arith.constant 62 : index
      %174 = memref.load %arg2[%c62] : memref<98xf32, #tpu.memory_space<smem>>
      %175 = vector.extract_strided_slice %111 {offsets = [0, 6], sizes = [16, 16], strides = [1, 1]} : vector<16x22xf32> to vector<16x16xf32>
      %176 = vector.broadcast %173 : f32 to vector<16x16xf32>
      %177 = arith.mulf %176, %175 : vector<16x16xf32>
      %178 = arith.addf %172, %177 : vector<16x16xf32>
      %179 = vector.extract_strided_slice %112 {offsets = [0, 6], sizes = [16, 16], strides = [1, 1]} : vector<16x22xf32> to vector<16x16xf32>
      %180 = vector.broadcast %174 : f32 to vector<16x16xf32>
      %181 = arith.mulf %180, %179 : vector<16x16xf32>
      %182 = arith.addf %178, %181 : vector<16x16xf32>
      %c2_46 = arith.constant 2 : index
      %c0_47 = arith.constant 0 : index
      %183 = vector.load %arg7[%c2_46, %c0_47] : memref<22x22xf32, #tpu.memory_space<vmem>>, vector<16x22xf32>
      %c2_48 = arith.constant 2 : index
      %c0_49 = arith.constant 0 : index
      %184 = vector.load %arg8[%c2_48, %c0_49] : memref<22x22xf32, #tpu.memory_space<vmem>>, vector<16x22xf32>
      %c14 = arith.constant 14 : index
      %185 = memref.load %arg2[%c14] : memref<98xf32, #tpu.memory_space<smem>>
      %c63 = arith.constant 63 : index
      %186 = memref.load %arg2[%c63] : memref<98xf32, #tpu.memory_space<smem>>
      %187 = vector.extract_strided_slice %183 {offsets = [0, 0], sizes = [16, 16], strides = [1, 1]} : vector<16x22xf32> to vector<16x16xf32>
      %188 = vector.broadcast %185 : f32 to vector<16x16xf32>
      %189 = arith.mulf %188, %187 : vector<16x16xf32>
      %190 = arith.addf %182, %189 : vector<16x16xf32>
      %191 = vector.extract_strided_slice %184 {offsets = [0, 0], sizes = [16, 16], strides = [1, 1]} : vector<16x22xf32> to vector<16x16xf32>
      %192 = vector.broadcast %186 : f32 to vector<16x16xf32>
      %193 = arith.mulf %192, %191 : vector<16x16xf32>
      %194 = arith.addf %190, %193 : vector<16x16xf32>
      %c15 = arith.constant 15 : index
      %195 = memref.load %arg2[%c15] : memref<98xf32, #tpu.memory_space<smem>>
      %c64 = arith.constant 64 : index
      %196 = memref.load %arg2[%c64] : memref<98xf32, #tpu.memory_space<smem>>
      %197 = vector.extract_strided_slice %183 {offsets = [0, 1], sizes = [16, 16], strides = [1, 1]} : vector<16x22xf32> to vector<16x16xf32>
      %198 = vector.broadcast %195 : f32 to vector<16x16xf32>
      %199 = arith.mulf %198, %197 : vector<16x16xf32>
      %200 = arith.addf %194, %199 : vector<16x16xf32>
      %201 = vector.extract_strided_slice %184 {offsets = [0, 1], sizes = [16, 16], strides = [1, 1]} : vector<16x22xf32> to vector<16x16xf32>
      %202 = vector.broadcast %196 : f32 to vector<16x16xf32>
      %203 = arith.mulf %202, %201 : vector<16x16xf32>
      %204 = arith.addf %200, %203 : vector<16x16xf32>
      %c16 = arith.constant 16 : index
      %205 = memref.load %arg2[%c16] : memref<98xf32, #tpu.memory_space<smem>>
      %c65 = arith.constant 65 : index
      %206 = memref.load %arg2[%c65] : memref<98xf32, #tpu.memory_space<smem>>
      %207 = vector.extract_strided_slice %183 {offsets = [0, 2], sizes = [16, 16], strides = [1, 1]} : vector<16x22xf32> to vector<16x16xf32>
      %208 = vector.broadcast %205 : f32 to vector<16x16xf32>
      %209 = arith.mulf %208, %207 : vector<16x16xf32>
      %210 = arith.addf %204, %209 : vector<16x16xf32>
      %211 = vector.extract_strided_slice %184 {offsets = [0, 2], sizes = [16, 16], strides = [1, 1]} : vector<16x22xf32> to vector<16x16xf32>
      %212 = vector.broadcast %206 : f32 to vector<16x16xf32>
      %213 = arith.mulf %212, %211 : vector<16x16xf32>
      %214 = arith.addf %210, %213 : vector<16x16xf32>
      %c17 = arith.constant 17 : index
      %215 = memref.load %arg2[%c17] : memref<98xf32, #tpu.memory_space<smem>>
      %c66 = arith.constant 66 : index
      %216 = memref.load %arg2[%c66] : memref<98xf32, #tpu.memory_space<smem>>
      %217 = vector.extract_strided_slice %183 {offsets = [0, 3], sizes = [16, 16], strides = [1, 1]} : vector<16x22xf32> to vector<16x16xf32>
      %218 = vector.broadcast %215 : f32 to vector<16x16xf32>
      %219 = arith.mulf %218, %217 : vector<16x16xf32>
      %220 = arith.addf %214, %219 : vector<16x16xf32>
      %221 = vector.extract_strided_slice %184 {offsets = [0, 3], sizes = [16, 16], strides = [1, 1]} : vector<16x22xf32> to vector<16x16xf32>
      %222 = vector.broadcast %216 : f32 to vector<16x16xf32>
      %223 = arith.mulf %222, %221 : vector<16x16xf32>
      %224 = arith.addf %220, %223 : vector<16x16xf32>
      %c18 = arith.constant 18 : index
      %225 = memref.load %arg2[%c18] : memref<98xf32, #tpu.memory_space<smem>>
      %c67 = arith.constant 67 : index
      %226 = memref.load %arg2[%c67] : memref<98xf32, #tpu.memory_space<smem>>
      %227 = vector.extract_strided_slice %183 {offsets = [0, 4], sizes = [16, 16], strides = [1, 1]} : vector<16x22xf32> to vector<16x16xf32>
      %228 = vector.broadcast %225 : f32 to vector<16x16xf32>
      %229 = arith.mulf %228, %227 : vector<16x16xf32>
      %230 = arith.addf %224, %229 : vector<16x16xf32>
      %231 = vector.extract_strided_slice %184 {offsets = [0, 4], sizes = [16, 16], strides = [1, 1]} : vector<16x22xf32> to vector<16x16xf32>
      %232 = vector.broadcast %226 : f32 to vector<16x16xf32>
      %233 = arith.mulf %232, %231 : vector<16x16xf32>
      %234 = arith.addf %230, %233 : vector<16x16xf32>
      %c19 = arith.constant 19 : index
      %235 = memref.load %arg2[%c19] : memref<98xf32, #tpu.memory_space<smem>>
      %c68 = arith.constant 68 : index
      %236 = memref.load %arg2[%c68] : memref<98xf32, #tpu.memory_space<smem>>
      %237 = vector.extract_strided_slice %183 {offsets = [0, 5], sizes = [16, 16], strides = [1, 1]} : vector<16x22xf32> to vector<16x16xf32>
      %238 = vector.broadcast %235 : f32 to vector<16x16xf32>
      %239 = arith.mulf %238, %237 : vector<16x16xf32>
      %240 = arith.addf %234, %239 : vector<16x16xf32>
      %241 = vector.extract_strided_slice %184 {offsets = [0, 5], sizes = [16, 16], strides = [1, 1]} : vector<16x22xf32> to vector<16x16xf32>
      %242 = vector.broadcast %236 : f32 to vector<16x16xf32>
      %243 = arith.mulf %242, %241 : vector<16x16xf32>
      %244 = arith.addf %240, %243 : vector<16x16xf32>
      %c20 = arith.constant 20 : index
      %245 = memref.load %arg2[%c20] : memref<98xf32, #tpu.memory_space<smem>>
      %c69 = arith.constant 69 : index
      %246 = memref.load %arg2[%c69] : memref<98xf32, #tpu.memory_space<smem>>
      %247 = vector.extract_strided_slice %183 {offsets = [0, 6], sizes = [16, 16], strides = [1, 1]} : vector<16x22xf32> to vector<16x16xf32>
      %248 = vector.broadcast %245 : f32 to vector<16x16xf32>
      %249 = arith.mulf %248, %247 : vector<16x16xf32>
      %250 = arith.addf %244, %249 : vector<16x16xf32>
      %251 = vector.extract_strided_slice %184 {offsets = [0, 6], sizes = [16, 16], strides = [1, 1]} : vector<16x22xf32> to vector<16x16xf32>
      %252 = vector.broadcast %246 : f32 to vector<16x16xf32>
      %253 = arith.mulf %252, %251 : vector<16x16xf32>
      %254 = arith.addf %250, %253 : vector<16x16xf32>
      %c3_50 = arith.constant 3 : index
      %c0_51 = arith.constant 0 : index
      %255 = vector.load %arg7[%c3_50, %c0_51] : memref<22x22xf32, #tpu.memory_space<vmem>>, vector<16x22xf32>
      %c3_52 = arith.constant 3 : index
      %c0_53 = arith.constant 0 : index
      %256 = vector.load %arg8[%c3_52, %c0_53] : memref<22x22xf32, #tpu.memory_space<vmem>>, vector<16x22xf32>
      %c21 = arith.constant 21 : index
      %257 = memref.load %arg2[%c21] : memref<98xf32, #tpu.memory_space<smem>>
      %c70 = arith.constant 70 : index
      %258 = memref.load %arg2[%c70] : memref<98xf32, #tpu.memory_space<smem>>
      %259 = vector.extract_strided_slice %255 {offsets = [0, 0], sizes = [16, 16], strides = [1, 1]} : vector<16x22xf32> to vector<16x16xf32>
      %260 = vector.broadcast %257 : f32 to vector<16x16xf32>
      %261 = arith.mulf %260, %259 : vector<16x16xf32>
      %262 = arith.addf %254, %261 : vector<16x16xf32>
      %263 = vector.extract_strided_slice %256 {offsets = [0, 0], sizes = [16, 16], strides = [1, 1]} : vector<16x22xf32> to vector<16x16xf32>
      %264 = vector.broadcast %258 : f32 to vector<16x16xf32>
      %265 = arith.mulf %264, %263 : vector<16x16xf32>
      %266 = arith.addf %262, %265 : vector<16x16xf32>
      %c22 = arith.constant 22 : index
      %267 = memref.load %arg2[%c22] : memref<98xf32, #tpu.memory_space<smem>>
      %c71 = arith.constant 71 : index
      %268 = memref.load %arg2[%c71] : memref<98xf32, #tpu.memory_space<smem>>
      %269 = vector.extract_strided_slice %255 {offsets = [0, 1], sizes = [16, 16], strides = [1, 1]} : vector<16x22xf32> to vector<16x16xf32>
      %270 = vector.broadcast %267 : f32 to vector<16x16xf32>
      %271 = arith.mulf %270, %269 : vector<16x16xf32>
      %272 = arith.addf %266, %271 : vector<16x16xf32>
      %273 = vector.extract_strided_slice %256 {offsets = [0, 1], sizes = [16, 16], strides = [1, 1]} : vector<16x22xf32> to vector<16x16xf32>
      %274 = vector.broadcast %268 : f32 to vector<16x16xf32>
      %275 = arith.mulf %274, %273 : vector<16x16xf32>
      %276 = arith.addf %272, %275 : vector<16x16xf32>
      %c23 = arith.constant 23 : index
      %277 = memref.load %arg2[%c23] : memref<98xf32, #tpu.memory_space<smem>>
      %c72 = arith.constant 72 : index
      %278 = memref.load %arg2[%c72] : memref<98xf32, #tpu.memory_space<smem>>
      %279 = vector.extract_strided_slice %255 {offsets = [0, 2], sizes = [16, 16], strides = [1, 1]} : vector<16x22xf32> to vector<16x16xf32>
      %280 = vector.broadcast %277 : f32 to vector<16x16xf32>
      %281 = arith.mulf %280, %279 : vector<16x16xf32>
      %282 = arith.addf %276, %281 : vector<16x16xf32>
      %283 = vector.extract_strided_slice %256 {offsets = [0, 2], sizes = [16, 16], strides = [1, 1]} : vector<16x22xf32> to vector<16x16xf32>
      %284 = vector.broadcast %278 : f32 to vector<16x16xf32>
      %285 = arith.mulf %284, %283 : vector<16x16xf32>
      %286 = arith.addf %282, %285 : vector<16x16xf32>
      %c24 = arith.constant 24 : index
      %287 = memref.load %arg2[%c24] : memref<98xf32, #tpu.memory_space<smem>>
      %c73 = arith.constant 73 : index
      %288 = memref.load %arg2[%c73] : memref<98xf32, #tpu.memory_space<smem>>
      %289 = vector.extract_strided_slice %255 {offsets = [0, 3], sizes = [16, 16], strides = [1, 1]} : vector<16x22xf32> to vector<16x16xf32>
      %290 = vector.broadcast %287 : f32 to vector<16x16xf32>
      %291 = arith.mulf %290, %289 : vector<16x16xf32>
      %292 = arith.addf %286, %291 : vector<16x16xf32>
      %293 = vector.extract_strided_slice %256 {offsets = [0, 3], sizes = [16, 16], strides = [1, 1]} : vector<16x22xf32> to vector<16x16xf32>
      %294 = vector.broadcast %288 : f32 to vector<16x16xf32>
      %295 = arith.mulf %294, %293 : vector<16x16xf32>
      %296 = arith.addf %292, %295 : vector<16x16xf32>
      %c25 = arith.constant 25 : index
      %297 = memref.load %arg2[%c25] : memref<98xf32, #tpu.memory_space<smem>>
      %c74 = arith.constant 74 : index
      %298 = memref.load %arg2[%c74] : memref<98xf32, #tpu.memory_space<smem>>
      %299 = vector.extract_strided_slice %255 {offsets = [0, 4], sizes = [16, 16], strides = [1, 1]} : vector<16x22xf32> to vector<16x16xf32>
      %300 = vector.broadcast %297 : f32 to vector<16x16xf32>
      %301 = arith.mulf %300, %299 : vector<16x16xf32>
      %302 = arith.addf %296, %301 : vector<16x16xf32>
      %303 = vector.extract_strided_slice %256 {offsets = [0, 4], sizes = [16, 16], strides = [1, 1]} : vector<16x22xf32> to vector<16x16xf32>
      %304 = vector.broadcast %298 : f32 to vector<16x16xf32>
      %305 = arith.mulf %304, %303 : vector<16x16xf32>
      %306 = arith.addf %302, %305 : vector<16x16xf32>
      %c26 = arith.constant 26 : index
      %307 = memref.load %arg2[%c26] : memref<98xf32, #tpu.memory_space<smem>>
      %c75 = arith.constant 75 : index
      %308 = memref.load %arg2[%c75] : memref<98xf32, #tpu.memory_space<smem>>
      %309 = vector.extract_strided_slice %255 {offsets = [0, 5], sizes = [16, 16], strides = [1, 1]} : vector<16x22xf32> to vector<16x16xf32>
      %310 = vector.broadcast %307 : f32 to vector<16x16xf32>
      %311 = arith.mulf %310, %309 : vector<16x16xf32>
      %312 = arith.addf %306, %311 : vector<16x16xf32>
      %313 = vector.extract_strided_slice %256 {offsets = [0, 5], sizes = [16, 16], strides = [1, 1]} : vector<16x22xf32> to vector<16x16xf32>
      %314 = vector.broadcast %308 : f32 to vector<16x16xf32>
      %315 = arith.mulf %314, %313 : vector<16x16xf32>
      %316 = arith.addf %312, %315 : vector<16x16xf32>
      %c27 = arith.constant 27 : index
      %317 = memref.load %arg2[%c27] : memref<98xf32, #tpu.memory_space<smem>>
      %c76 = arith.constant 76 : index
      %318 = memref.load %arg2[%c76] : memref<98xf32, #tpu.memory_space<smem>>
      %319 = vector.extract_strided_slice %255 {offsets = [0, 6], sizes = [16, 16], strides = [1, 1]} : vector<16x22xf32> to vector<16x16xf32>
      %320 = vector.broadcast %317 : f32 to vector<16x16xf32>
      %321 = arith.mulf %320, %319 : vector<16x16xf32>
      %322 = arith.addf %316, %321 : vector<16x16xf32>
      %323 = vector.extract_strided_slice %256 {offsets = [0, 6], sizes = [16, 16], strides = [1, 1]} : vector<16x22xf32> to vector<16x16xf32>
      %324 = vector.broadcast %318 : f32 to vector<16x16xf32>
      %325 = arith.mulf %324, %323 : vector<16x16xf32>
      %326 = arith.addf %322, %325 : vector<16x16xf32>
      %c4_54 = arith.constant 4 : index
      %c0_55 = arith.constant 0 : index
      %327 = vector.load %arg7[%c4_54, %c0_55] : memref<22x22xf32, #tpu.memory_space<vmem>>, vector<16x22xf32>
      %c4_56 = arith.constant 4 : index
      %c0_57 = arith.constant 0 : index
      %328 = vector.load %arg8[%c4_56, %c0_57] : memref<22x22xf32, #tpu.memory_space<vmem>>, vector<16x22xf32>
      %c28 = arith.constant 28 : index
      %329 = memref.load %arg2[%c28] : memref<98xf32, #tpu.memory_space<smem>>
      %c77 = arith.constant 77 : index
      %330 = memref.load %arg2[%c77] : memref<98xf32, #tpu.memory_space<smem>>
      %331 = vector.extract_strided_slice %327 {offsets = [0, 0], sizes = [16, 16], strides = [1, 1]} : vector<16x22xf32> to vector<16x16xf32>
      %332 = vector.broadcast %329 : f32 to vector<16x16xf32>
      %333 = arith.mulf %332, %331 : vector<16x16xf32>
      %334 = arith.addf %326, %333 : vector<16x16xf32>
      %335 = vector.extract_strided_slice %328 {offsets = [0, 0], sizes = [16, 16], strides = [1, 1]} : vector<16x22xf32> to vector<16x16xf32>
      %336 = vector.broadcast %330 : f32 to vector<16x16xf32>
      %337 = arith.mulf %336, %335 : vector<16x16xf32>
      %338 = arith.addf %334, %337 : vector<16x16xf32>
      %c29 = arith.constant 29 : index
      %339 = memref.load %arg2[%c29] : memref<98xf32, #tpu.memory_space<smem>>
      %c78 = arith.constant 78 : index
      %340 = memref.load %arg2[%c78] : memref<98xf32, #tpu.memory_space<smem>>
      %341 = vector.extract_strided_slice %327 {offsets = [0, 1], sizes = [16, 16], strides = [1, 1]} : vector<16x22xf32> to vector<16x16xf32>
      %342 = vector.broadcast %339 : f32 to vector<16x16xf32>
      %343 = arith.mulf %342, %341 : vector<16x16xf32>
      %344 = arith.addf %338, %343 : vector<16x16xf32>
      %345 = vector.extract_strided_slice %328 {offsets = [0, 1], sizes = [16, 16], strides = [1, 1]} : vector<16x22xf32> to vector<16x16xf32>
      %346 = vector.broadcast %340 : f32 to vector<16x16xf32>
      %347 = arith.mulf %346, %345 : vector<16x16xf32>
      %348 = arith.addf %344, %347 : vector<16x16xf32>
      %c30 = arith.constant 30 : index
      %349 = memref.load %arg2[%c30] : memref<98xf32, #tpu.memory_space<smem>>
      %c79 = arith.constant 79 : index
      %350 = memref.load %arg2[%c79] : memref<98xf32, #tpu.memory_space<smem>>
      %351 = vector.extract_strided_slice %327 {offsets = [0, 2], sizes = [16, 16], strides = [1, 1]} : vector<16x22xf32> to vector<16x16xf32>
      %352 = vector.broadcast %349 : f32 to vector<16x16xf32>
      %353 = arith.mulf %352, %351 : vector<16x16xf32>
      %354 = arith.addf %348, %353 : vector<16x16xf32>
      %355 = vector.extract_strided_slice %328 {offsets = [0, 2], sizes = [16, 16], strides = [1, 1]} : vector<16x22xf32> to vector<16x16xf32>
      %356 = vector.broadcast %350 : f32 to vector<16x16xf32>
      %357 = arith.mulf %356, %355 : vector<16x16xf32>
      %358 = arith.addf %354, %357 : vector<16x16xf32>
      %c31 = arith.constant 31 : index
      %359 = memref.load %arg2[%c31] : memref<98xf32, #tpu.memory_space<smem>>
      %c80 = arith.constant 80 : index
      %360 = memref.load %arg2[%c80] : memref<98xf32, #tpu.memory_space<smem>>
      %361 = vector.extract_strided_slice %327 {offsets = [0, 3], sizes = [16, 16], strides = [1, 1]} : vector<16x22xf32> to vector<16x16xf32>
      %362 = vector.broadcast %359 : f32 to vector<16x16xf32>
      %363 = arith.mulf %362, %361 : vector<16x16xf32>
      %364 = arith.addf %358, %363 : vector<16x16xf32>
      %365 = vector.extract_strided_slice %328 {offsets = [0, 3], sizes = [16, 16], strides = [1, 1]} : vector<16x22xf32> to vector<16x16xf32>
      %366 = vector.broadcast %360 : f32 to vector<16x16xf32>
      %367 = arith.mulf %366, %365 : vector<16x16xf32>
      %368 = arith.addf %364, %367 : vector<16x16xf32>
      %c32 = arith.constant 32 : index
      %369 = memref.load %arg2[%c32] : memref<98xf32, #tpu.memory_space<smem>>
      %c81 = arith.constant 81 : index
      %370 = memref.load %arg2[%c81] : memref<98xf32, #tpu.memory_space<smem>>
      %371 = vector.extract_strided_slice %327 {offsets = [0, 4], sizes = [16, 16], strides = [1, 1]} : vector<16x22xf32> to vector<16x16xf32>
      %372 = vector.broadcast %369 : f32 to vector<16x16xf32>
      %373 = arith.mulf %372, %371 : vector<16x16xf32>
      %374 = arith.addf %368, %373 : vector<16x16xf32>
      %375 = vector.extract_strided_slice %328 {offsets = [0, 4], sizes = [16, 16], strides = [1, 1]} : vector<16x22xf32> to vector<16x16xf32>
      %376 = vector.broadcast %370 : f32 to vector<16x16xf32>
      %377 = arith.mulf %376, %375 : vector<16x16xf32>
      %378 = arith.addf %374, %377 : vector<16x16xf32>
      %c33 = arith.constant 33 : index
      %379 = memref.load %arg2[%c33] : memref<98xf32, #tpu.memory_space<smem>>
      %c82 = arith.constant 82 : index
      %380 = memref.load %arg2[%c82] : memref<98xf32, #tpu.memory_space<smem>>
      %381 = vector.extract_strided_slice %327 {offsets = [0, 5], sizes = [16, 16], strides = [1, 1]} : vector<16x22xf32> to vector<16x16xf32>
      %382 = vector.broadcast %379 : f32 to vector<16x16xf32>
      %383 = arith.mulf %382, %381 : vector<16x16xf32>
      %384 = arith.addf %378, %383 : vector<16x16xf32>
      %385 = vector.extract_strided_slice %328 {offsets = [0, 5], sizes = [16, 16], strides = [1, 1]} : vector<16x22xf32> to vector<16x16xf32>
      %386 = vector.broadcast %380 : f32 to vector<16x16xf32>
      %387 = arith.mulf %386, %385 : vector<16x16xf32>
      %388 = arith.addf %384, %387 : vector<16x16xf32>
      %c34 = arith.constant 34 : index
      %389 = memref.load %arg2[%c34] : memref<98xf32, #tpu.memory_space<smem>>
      %c83 = arith.constant 83 : index
      %390 = memref.load %arg2[%c83] : memref<98xf32, #tpu.memory_space<smem>>
      %391 = vector.extract_strided_slice %327 {offsets = [0, 6], sizes = [16, 16], strides = [1, 1]} : vector<16x22xf32> to vector<16x16xf32>
      %392 = vector.broadcast %389 : f32 to vector<16x16xf32>
      %393 = arith.mulf %392, %391 : vector<16x16xf32>
      %394 = arith.addf %388, %393 : vector<16x16xf32>
      %395 = vector.extract_strided_slice %328 {offsets = [0, 6], sizes = [16, 16], strides = [1, 1]} : vector<16x22xf32> to vector<16x16xf32>
      %396 = vector.broadcast %390 : f32 to vector<16x16xf32>
      %397 = arith.mulf %396, %395 : vector<16x16xf32>
      %398 = arith.addf %394, %397 : vector<16x16xf32>
      %c5_58 = arith.constant 5 : index
      %c0_59 = arith.constant 0 : index
      %399 = vector.load %arg7[%c5_58, %c0_59] : memref<22x22xf32, #tpu.memory_space<vmem>>, vector<16x22xf32>
      %c5_60 = arith.constant 5 : index
      %c0_61 = arith.constant 0 : index
      %400 = vector.load %arg8[%c5_60, %c0_61] : memref<22x22xf32, #tpu.memory_space<vmem>>, vector<16x22xf32>
      %c35 = arith.constant 35 : index
      %401 = memref.load %arg2[%c35] : memref<98xf32, #tpu.memory_space<smem>>
      %c84 = arith.constant 84 : index
      %402 = memref.load %arg2[%c84] : memref<98xf32, #tpu.memory_space<smem>>
      %403 = vector.extract_strided_slice %399 {offsets = [0, 0], sizes = [16, 16], strides = [1, 1]} : vector<16x22xf32> to vector<16x16xf32>
      %404 = vector.broadcast %401 : f32 to vector<16x16xf32>
      %405 = arith.mulf %404, %403 : vector<16x16xf32>
      %406 = arith.addf %398, %405 : vector<16x16xf32>
      %407 = vector.extract_strided_slice %400 {offsets = [0, 0], sizes = [16, 16], strides = [1, 1]} : vector<16x22xf32> to vector<16x16xf32>
      %408 = vector.broadcast %402 : f32 to vector<16x16xf32>
      %409 = arith.mulf %408, %407 : vector<16x16xf32>
      %410 = arith.addf %406, %409 : vector<16x16xf32>
      %c36 = arith.constant 36 : index
      %411 = memref.load %arg2[%c36] : memref<98xf32, #tpu.memory_space<smem>>
      %c85 = arith.constant 85 : index
      %412 = memref.load %arg2[%c85] : memref<98xf32, #tpu.memory_space<smem>>
      %413 = vector.extract_strided_slice %399 {offsets = [0, 1], sizes = [16, 16], strides = [1, 1]} : vector<16x22xf32> to vector<16x16xf32>
      %414 = vector.broadcast %411 : f32 to vector<16x16xf32>
      %415 = arith.mulf %414, %413 : vector<16x16xf32>
      %416 = arith.addf %410, %415 : vector<16x16xf32>
      %417 = vector.extract_strided_slice %400 {offsets = [0, 1], sizes = [16, 16], strides = [1, 1]} : vector<16x22xf32> to vector<16x16xf32>
      %418 = vector.broadcast %412 : f32 to vector<16x16xf32>
      %419 = arith.mulf %418, %417 : vector<16x16xf32>
      %420 = arith.addf %416, %419 : vector<16x16xf32>
      %c37 = arith.constant 37 : index
      %421 = memref.load %arg2[%c37] : memref<98xf32, #tpu.memory_space<smem>>
      %c86 = arith.constant 86 : index
      %422 = memref.load %arg2[%c86] : memref<98xf32, #tpu.memory_space<smem>>
      %423 = vector.extract_strided_slice %399 {offsets = [0, 2], sizes = [16, 16], strides = [1, 1]} : vector<16x22xf32> to vector<16x16xf32>
      %424 = vector.broadcast %421 : f32 to vector<16x16xf32>
      %425 = arith.mulf %424, %423 : vector<16x16xf32>
      %426 = arith.addf %420, %425 : vector<16x16xf32>
      %427 = vector.extract_strided_slice %400 {offsets = [0, 2], sizes = [16, 16], strides = [1, 1]} : vector<16x22xf32> to vector<16x16xf32>
      %428 = vector.broadcast %422 : f32 to vector<16x16xf32>
      %429 = arith.mulf %428, %427 : vector<16x16xf32>
      %430 = arith.addf %426, %429 : vector<16x16xf32>
      %c38 = arith.constant 38 : index
      %431 = memref.load %arg2[%c38] : memref<98xf32, #tpu.memory_space<smem>>
      %c87 = arith.constant 87 : index
      %432 = memref.load %arg2[%c87] : memref<98xf32, #tpu.memory_space<smem>>
      %433 = vector.extract_strided_slice %399 {offsets = [0, 3], sizes = [16, 16], strides = [1, 1]} : vector<16x22xf32> to vector<16x16xf32>
      %434 = vector.broadcast %431 : f32 to vector<16x16xf32>
      %435 = arith.mulf %434, %433 : vector<16x16xf32>
      %436 = arith.addf %430, %435 : vector<16x16xf32>
      %437 = vector.extract_strided_slice %400 {offsets = [0, 3], sizes = [16, 16], strides = [1, 1]} : vector<16x22xf32> to vector<16x16xf32>
      %438 = vector.broadcast %432 : f32 to vector<16x16xf32>
      %439 = arith.mulf %438, %437 : vector<16x16xf32>
      %440 = arith.addf %436, %439 : vector<16x16xf32>
      %c39 = arith.constant 39 : index
      %441 = memref.load %arg2[%c39] : memref<98xf32, #tpu.memory_space<smem>>
      %c88 = arith.constant 88 : index
      %442 = memref.load %arg2[%c88] : memref<98xf32, #tpu.memory_space<smem>>
      %443 = vector.extract_strided_slice %399 {offsets = [0, 4], sizes = [16, 16], strides = [1, 1]} : vector<16x22xf32> to vector<16x16xf32>
      %444 = vector.broadcast %441 : f32 to vector<16x16xf32>
      %445 = arith.mulf %444, %443 : vector<16x16xf32>
      %446 = arith.addf %440, %445 : vector<16x16xf32>
      %447 = vector.extract_strided_slice %400 {offsets = [0, 4], sizes = [16, 16], strides = [1, 1]} : vector<16x22xf32> to vector<16x16xf32>
      %448 = vector.broadcast %442 : f32 to vector<16x16xf32>
      %449 = arith.mulf %448, %447 : vector<16x16xf32>
      %450 = arith.addf %446, %449 : vector<16x16xf32>
      %c40 = arith.constant 40 : index
      %451 = memref.load %arg2[%c40] : memref<98xf32, #tpu.memory_space<smem>>
      %c89 = arith.constant 89 : index
      %452 = memref.load %arg2[%c89] : memref<98xf32, #tpu.memory_space<smem>>
      %453 = vector.extract_strided_slice %399 {offsets = [0, 5], sizes = [16, 16], strides = [1, 1]} : vector<16x22xf32> to vector<16x16xf32>
      %454 = vector.broadcast %451 : f32 to vector<16x16xf32>
      %455 = arith.mulf %454, %453 : vector<16x16xf32>
      %456 = arith.addf %450, %455 : vector<16x16xf32>
      %457 = vector.extract_strided_slice %400 {offsets = [0, 5], sizes = [16, 16], strides = [1, 1]} : vector<16x22xf32> to vector<16x16xf32>
      %458 = vector.broadcast %452 : f32 to vector<16x16xf32>
      %459 = arith.mulf %458, %457 : vector<16x16xf32>
      %460 = arith.addf %456, %459 : vector<16x16xf32>
      %c41 = arith.constant 41 : index
      %461 = memref.load %arg2[%c41] : memref<98xf32, #tpu.memory_space<smem>>
      %c90 = arith.constant 90 : index
      %462 = memref.load %arg2[%c90] : memref<98xf32, #tpu.memory_space<smem>>
      %463 = vector.extract_strided_slice %399 {offsets = [0, 6], sizes = [16, 16], strides = [1, 1]} : vector<16x22xf32> to vector<16x16xf32>
      %464 = vector.broadcast %461 : f32 to vector<16x16xf32>
      %465 = arith.mulf %464, %463 : vector<16x16xf32>
      %466 = arith.addf %460, %465 : vector<16x16xf32>
      %467 = vector.extract_strided_slice %400 {offsets = [0, 6], sizes = [16, 16], strides = [1, 1]} : vector<16x22xf32> to vector<16x16xf32>
      %468 = vector.broadcast %462 : f32 to vector<16x16xf32>
      %469 = arith.mulf %468, %467 : vector<16x16xf32>
      %470 = arith.addf %466, %469 : vector<16x16xf32>
      %c6_62 = arith.constant 6 : index
      %c0_63 = arith.constant 0 : index
      %471 = vector.load %arg7[%c6_62, %c0_63] : memref<22x22xf32, #tpu.memory_space<vmem>>, vector<16x22xf32>
      %c6_64 = arith.constant 6 : index
      %c0_65 = arith.constant 0 : index
      %472 = vector.load %arg8[%c6_64, %c0_65] : memref<22x22xf32, #tpu.memory_space<vmem>>, vector<16x22xf32>
      %c42 = arith.constant 42 : index
      %473 = memref.load %arg2[%c42] : memref<98xf32, #tpu.memory_space<smem>>
      %c91 = arith.constant 91 : index
      %474 = memref.load %arg2[%c91] : memref<98xf32, #tpu.memory_space<smem>>
      %475 = vector.extract_strided_slice %471 {offsets = [0, 0], sizes = [16, 16], strides = [1, 1]} : vector<16x22xf32> to vector<16x16xf32>
      %476 = vector.broadcast %473 : f32 to vector<16x16xf32>
      %477 = arith.mulf %476, %475 : vector<16x16xf32>
      %478 = arith.addf %470, %477 : vector<16x16xf32>
      %479 = vector.extract_strided_slice %472 {offsets = [0, 0], sizes = [16, 16], strides = [1, 1]} : vector<16x22xf32> to vector<16x16xf32>
      %480 = vector.broadcast %474 : f32 to vector<16x16xf32>
      %481 = arith.mulf %480, %479 : vector<16x16xf32>
      %482 = arith.addf %478, %481 : vector<16x16xf32>
      %c43 = arith.constant 43 : index
      %483 = memref.load %arg2[%c43] : memref<98xf32, #tpu.memory_space<smem>>
      %c92 = arith.constant 92 : index
      %484 = memref.load %arg2[%c92] : memref<98xf32, #tpu.memory_space<smem>>
      %485 = vector.extract_strided_slice %471 {offsets = [0, 1], sizes = [16, 16], strides = [1, 1]} : vector<16x22xf32> to vector<16x16xf32>
      %486 = vector.broadcast %483 : f32 to vector<16x16xf32>
      %487 = arith.mulf %486, %485 : vector<16x16xf32>
      %488 = arith.addf %482, %487 : vector<16x16xf32>
      %489 = vector.extract_strided_slice %472 {offsets = [0, 1], sizes = [16, 16], strides = [1, 1]} : vector<16x22xf32> to vector<16x16xf32>
      %490 = vector.broadcast %484 : f32 to vector<16x16xf32>
      %491 = arith.mulf %490, %489 : vector<16x16xf32>
      %492 = arith.addf %488, %491 : vector<16x16xf32>
      %c44 = arith.constant 44 : index
      %493 = memref.load %arg2[%c44] : memref<98xf32, #tpu.memory_space<smem>>
      %c93 = arith.constant 93 : index
      %494 = memref.load %arg2[%c93] : memref<98xf32, #tpu.memory_space<smem>>
      %495 = vector.extract_strided_slice %471 {offsets = [0, 2], sizes = [16, 16], strides = [1, 1]} : vector<16x22xf32> to vector<16x16xf32>
      %496 = vector.broadcast %493 : f32 to vector<16x16xf32>
      %497 = arith.mulf %496, %495 : vector<16x16xf32>
      %498 = arith.addf %492, %497 : vector<16x16xf32>
      %499 = vector.extract_strided_slice %472 {offsets = [0, 2], sizes = [16, 16], strides = [1, 1]} : vector<16x22xf32> to vector<16x16xf32>
      %500 = vector.broadcast %494 : f32 to vector<16x16xf32>
      %501 = arith.mulf %500, %499 : vector<16x16xf32>
      %502 = arith.addf %498, %501 : vector<16x16xf32>
      %c45 = arith.constant 45 : index
      %503 = memref.load %arg2[%c45] : memref<98xf32, #tpu.memory_space<smem>>
      %c94 = arith.constant 94 : index
      %504 = memref.load %arg2[%c94] : memref<98xf32, #tpu.memory_space<smem>>
      %505 = vector.extract_strided_slice %471 {offsets = [0, 3], sizes = [16, 16], strides = [1, 1]} : vector<16x22xf32> to vector<16x16xf32>
      %506 = vector.broadcast %503 : f32 to vector<16x16xf32>
      %507 = arith.mulf %506, %505 : vector<16x16xf32>
      %508 = arith.addf %502, %507 : vector<16x16xf32>
      %509 = vector.extract_strided_slice %472 {offsets = [0, 3], sizes = [16, 16], strides = [1, 1]} : vector<16x22xf32> to vector<16x16xf32>
      %510 = vector.broadcast %504 : f32 to vector<16x16xf32>
      %511 = arith.mulf %510, %509 : vector<16x16xf32>
      %512 = arith.addf %508, %511 : vector<16x16xf32>
      %c46 = arith.constant 46 : index
      %513 = memref.load %arg2[%c46] : memref<98xf32, #tpu.memory_space<smem>>
      %c95 = arith.constant 95 : index
      %514 = memref.load %arg2[%c95] : memref<98xf32, #tpu.memory_space<smem>>
      %515 = vector.extract_strided_slice %471 {offsets = [0, 4], sizes = [16, 16], strides = [1, 1]} : vector<16x22xf32> to vector<16x16xf32>
      %516 = vector.broadcast %513 : f32 to vector<16x16xf32>
      %517 = arith.mulf %516, %515 : vector<16x16xf32>
      %518 = arith.addf %512, %517 : vector<16x16xf32>
      %519 = vector.extract_strided_slice %472 {offsets = [0, 4], sizes = [16, 16], strides = [1, 1]} : vector<16x22xf32> to vector<16x16xf32>
      %520 = vector.broadcast %514 : f32 to vector<16x16xf32>
      %521 = arith.mulf %520, %519 : vector<16x16xf32>
      %522 = arith.addf %518, %521 : vector<16x16xf32>
      %c47 = arith.constant 47 : index
      %523 = memref.load %arg2[%c47] : memref<98xf32, #tpu.memory_space<smem>>
      %c96 = arith.constant 96 : index
      %524 = memref.load %arg2[%c96] : memref<98xf32, #tpu.memory_space<smem>>
      %525 = vector.extract_strided_slice %471 {offsets = [0, 5], sizes = [16, 16], strides = [1, 1]} : vector<16x22xf32> to vector<16x16xf32>
      %526 = vector.broadcast %523 : f32 to vector<16x16xf32>
      %527 = arith.mulf %526, %525 : vector<16x16xf32>
      %528 = arith.addf %522, %527 : vector<16x16xf32>
      %529 = vector.extract_strided_slice %472 {offsets = [0, 5], sizes = [16, 16], strides = [1, 1]} : vector<16x22xf32> to vector<16x16xf32>
      %530 = vector.broadcast %524 : f32 to vector<16x16xf32>
      %531 = arith.mulf %530, %529 : vector<16x16xf32>
      %532 = arith.addf %528, %531 : vector<16x16xf32>
      %c48 = arith.constant 48 : index
      %533 = memref.load %arg2[%c48] : memref<98xf32, #tpu.memory_space<smem>>
      %c97 = arith.constant 97 : index
      %534 = memref.load %arg2[%c97] : memref<98xf32, #tpu.memory_space<smem>>
      %535 = vector.extract_strided_slice %471 {offsets = [0, 6], sizes = [16, 16], strides = [1, 1]} : vector<16x22xf32> to vector<16x16xf32>
      %536 = vector.broadcast %533 : f32 to vector<16x16xf32>
      %537 = arith.mulf %536, %535 : vector<16x16xf32>
      %538 = arith.addf %532, %537 : vector<16x16xf32>
      %539 = vector.extract_strided_slice %472 {offsets = [0, 6], sizes = [16, 16], strides = [1, 1]} : vector<16x22xf32> to vector<16x16xf32>
      %540 = vector.broadcast %534 : f32 to vector<16x16xf32>
      %541 = arith.mulf %540, %539 : vector<16x16xf32>
      %542 = arith.addf %538, %541 : vector<16x16xf32>
      %543 = arith.negf %542 : vector<16x16xf32>
      %544 = math.exp %543 : vector<16x16xf32>
      %cst_66 = arith.constant 1.000000e+00 : f32
      %545 = vector.broadcast %cst_66 : f32 to vector<16x16xf32>
      %546 = arith.addf %545, %544 : vector<16x16xf32>
      %547 = arith.divf %545, %546 : vector<16x16xf32>
      %c0_67 = arith.constant 0 : index
      %c0_68 = arith.constant 0 : index
      %c0_69 = arith.constant 0 : index
      %c0_70 = arith.constant 0 : index
      %548 = vector.load %arg4[%c0_67, %c0_68, %c0_69, %c0_70] : memref<1x1x16x16xf32, #tpu.memory_space<vmem>>, vector<1x1x16x16xf32>
      %549 = vector.shape_cast %548 : vector<1x1x16x16xf32> to vector<16x16xf32>
      %550 = vector.shape_cast %547 : vector<16x16xf32> to vector<1x1x16x16xf32>
      tpu.vector_store %arg4[%c0_67, %c0_68, %c0_69, %c0_70], %550 {strides = array<i32>} : memref<1x1x16x16xf32, #tpu.memory_space<vmem>>, vector<1x1x16x16xf32>,
    } else {
    }
    return
  }
  func.func @transform_0(%arg0: i32, %arg1: i32) -> i32 {
    %c0_i32 = arith.constant 0 : i32
    %c0_i32_0 = arith.constant 0 : i32
    return %c0_i32 : i32
  }
  func.func @transform_1(%arg0: i32, %arg1: i32) -> (i32, i32, i32, i32) {
    %c0_i32 = arith.constant 0 : i32
    %c0_i32_0 = arith.constant 0 : i32
    %c0_i32_1 = arith.constant 0 : i32
    return %arg0, %arg1, %c0_i32, %c0_i32_0 : i32, i32, i32, i32
  }
  func.func @transform_2(%arg0: i32, %arg1: i32) -> (i32, i32, i32, i32) {
    %c0_i32 = arith.constant 0 : i32
    %c0_i32_0 = arith.constant 0 : i32
    %c0_i32_1 = arith.constant 0 : i32
    %c0_i32_2 = arith.constant 0 : i32
    return %arg0, %c0_i32, %c0_i32_0, %c0_i32_1 : i32, i32, i32, i32
  }
}

</mosaic_0001>

<bundles_post_ra>
// kernel: tpu_custom_call.1
= control target key start
LH: loop header
LB: loop body
LE: loop exit
PB: predicated region body
PF: predicated region fallthrough
CT: control target
= control target key end

     0   :  { %s2828_s0 = inlined_call_operand.hbm [shape: f32[98], index: 0, kind: input, shape index: {}]   ;;  %s2829_s1 = inlined_call_operand.hbm [shape: f32[2,4,16,16], index: 1, kind: input, shape index: {}]   ;;  %s2830_s2 = inlined_call_operand.hbm [shape: f32[2,1,16,16], index: 2, kind: output, shape index: {}]  }
   0x1   :  { %2831 = sst [smem:[#allocation15_spill]] %s2828_s0 }
   0x2   :  { %7 = vsyncpa [#allocation9], 0 }
   0x3   :  { %8 = vsyncpa [#allocation7], 0 }
   0x4   :  { %10 = vsyncpa [#allocation7 + $0x1], 0 }
   0x5   :  { %11 = vsyncpa [#allocation8], 0 }
   0x6   :  { %13 = vsyncpa [#allocation8 + $0x1], 0  ;;  %s2059_s9 = smov 0   ;;  %s2061_s10 = smov 0  }
   0x7   :  { %s2063_s11 = smov 0   ;;  %s2065_s12 = smov 0  }
   0x8   :  { %s2067_s13 = smov 0   ;;  %s2069_s14 = smov 0  }
   0x9 LB: > { %s1685_s15 = sadd.s32 4294967295, %s2026_s14   ;;  %s1686_s16 = sadd.s32 4294967294, %s2026_s14   ;;  %s2026_s14 = sphi %s2069_s14, %s19_s14   ;;  %s2022_s13 = sphi %s2067_s13, %s2845_s13   ;;  %s2018_s12 = sphi %s2065_s12, %s2844_s12   ;;  %s2014_s11 = sphi %s2063_s11, %s2843_s11   ;;  %s2010_s10 = sphi %s2061_s10, %s2842_s10   ;;  %s2006_s9 = sphi %s2059_s9, %s2841_s9  }
   0xa   : > { %s61_s17 = sadd.s32 1, %s2014_s11  ;;  %p68_p0 = scmp.ne.s32.totalorder %s2014_s11, %s2010_s10 }
   0xb   : > { %p69_p1 = scmp.eq.s32.totalorder %s2026_s14, 0  ;;  %p74_p2 = scmp.ne.s32.totalorder %s2010_s10, %s2006_s9 }
   0xc   : > { %p2097_p3 = scmp.eq.s32.totalorder %s1685_s15, 0  ;;  %p98_p4 = scmp.eq.s32.totalorder %s1685_s15, 1 }
   0xd   : > { %p70_p5 = por %p69_p1, %p68_p0  ;;  %p104_p6 = scmp.eq.s32.totalorder %s1686_s16, 1 }
   0xe   : > { %p2103_p7 = por %p2097_p3, %p74_p2  ;;  %p2107_p8 = por %p98_p4, %p68_p0 }
   0xf   : > { %p2111_p9 = por %p104_p6, %p74_p2  ;;  %p1687_p10 = scmp.ge.s32.totalorder %s2026_s14, 1 }
  0x10   : > { %p111_p11 = scmp.lt.s32.totalorder %s2026_s14, 3  ;;  %p1830_p1 = scmp.lt.s32.totalorder %s2026_s14, 2 }
  0x11   : > { %s2835_s21 = scalar_select %p2111_p9, 1, 0 }
  0x12   : > { %p2118_p13 = pnand %p1687_p10, %p111_p11  ;;  %s133_s23 = sand.u32 1, %s2014_s11  }
  0x13   : > { %p2126_p2 = pnand %p1830_p1, %p70_p5  ;;  %s31_s25 = sadd.s32 1, %s2022_s13 }
  0x14   : > { %p1817_p0 = pneg %p2118_p13  ;;  %s1690_s26 = sshll.u32 %s133_s23, 6 }
  0x15   : > { %p33_p6 = scmp.ge.s32.totalorder %s31_s25, 2  ;;  %s2028_s27 = smov [#allocation6]  }
  0x16   : > { %p1818_p4 = pnand %p1817_p0, %p2097_p3  ;;  %s2838_s0 = sld [smem:[#allocation15_spill]] }
  0x17   : > { %s2847_s25 = smov (%p33_p6, %s31_s25), 0  ;;  %s1807_s30 = sshll.u32 %s2022_s13, 10 }
  0x18   : > { %s56_s3 = ssub.s32 %s2022_s13, %s2847_s25  ;;  %s146_s6 = scalar_lea.hbm %s2829_s1, %s1807_s30 }
  0x19   : > { %p59_p5 = scmp.eq.s32.totalorder %s56_s3, 0  ;;  %s137_s7 = scalar_lea.vmem [#allocation10], %s1690_s26 }
  0x1a   : > { %s147_s8 = sshll.u32 %s137_s7, 4  ;;  %s134_s16 = scalar_lea.sflag [#allocation7], %s133_s23  ;;  %s148_s8 = int_to_ptr.vmem [resolvable:$true] %s147_s8 }
  0x1b   : > { %s2147_s15 = scalar_select %p59_p5, %s2014_s11, %s61_s17  }
  0x1c   : > { %1820 = dma.hbm_to_smem (!%p1818_p4), %s2838_s0, 16, %s2028_s27, [#allocation9]  }
  0x1d   : > { %p1916_p10 = pneg %p2126_p2  ;;  %s1927_s27 = scalar_lea.vmem %s148_s8, 1024 }
  0x1e   : > { %p1928_p11 = scmp.ne.s32.totalorder %s148_s8, %s1927_s27  ;;  %s2029_s28 = smov [#allocation10]  }
  0x1f   : > { %s1932_s29 = sshll.u32 %s2029_s28, 4  ;;  %s1933_s29 = int_to_ptr.vmem [resolvable:$false] %s1932_s29 }
  0x20   : > { %p1930_p1 = pnand %p1928_p11, %p1916_p10  ;;  %s1934_s0 = scalar_lea.vmem %s1933_s29, 2048 }
  0x21   : > { %p1935_p4 = scmp.lt.s32.totalorder %s148_s8, %s1933_s29  ;;  %p1936_p6 = scmp.lt.s32.totalorder %s1934_s0, %s1927_s27 }
  0x22   : > { %p1931_p0 = pneg %p1930_p1 }
  0x23   : > { %p1937_p12 = por %p1936_p6, %p1935_p4 }
  0x25   : > { %p1938_p9 = pnand %p1937_p12, %p1931_p0 }
  0x27   : > { %1941 = shalt.err (!%p1938_p9)
}
  0x28   : > { %s2030_s26 = smov 128   ;;  %s2031_s17 = smov 8  }
  0x29   : > { %1824 = dma.hbm_to_vmem [thread:$0]  (!%p2126_p2), %s146_s6, 1024, %s148_s8, %s134_s16, %s2030_s26, %s2030_s26, %s2031_s17  }
  0x2a   : > { %159 = sbr.rel (%p2118_p13) target bundleno = 704 (0x2c0), region = 28 }
  0x2f   : > { %1993 = dma.done.wait (%p2097_p3), [#allocation9], 16  }
  0x30   : > { %1995 = vsyncadd (%p2097_p3), [#allocation9], 4294967280  ;;  %s2160_s0 = sand.u32 1, %s2010_s10  }
  0x31   : > { %s1695_s23 = sshll.u32 %s2160_s0, 6  ;;  %s166_s30 = scalar_lea.sflag [#allocation7], %s2160_s0 }
  0x32   : > { %s2164_s3 = scalar_lea.vmem [#allocation10], %s1695_s23 }
  0x33   : > { %1997 = dma.done.wait (%p2103_p7), %s166_s30, 1024  }
  0x34   : > { %1999 = vsyncadd (%p2103_p7), %s166_s30, 4294966272 }
  0x35   : > { %174 = sfence }
  0x36   : > { %vm196_vm0 = vcmask 130048   ;;  %v2032_v0 = vmov -inf   ;;  %vm240_vm1 = vcmask 179200   ;;  %v2033_v1 = vmov 0.0   ;;  %v205_v2 = vld [vmem:[%s2164_s3] sm:$0xff]  ;;  %v206_v3 = vld [vmem:[%s2164_s3 + $0x8] sm:$0xff] }
  0x37   : > { %199 = vst.msk [vmem:[#allocation3] sm:$0xff] %vm196_vm0, %v2032_v0  ;;  %200 = vst.msk [vmem:[#allocation3 + $0x8] sm:$0xff] %vm196_vm0, %v2032_v0  ;;  %v1697_v4 = vld [vmem:[%s2164_s3 + $0x10] sm:$0xff]  ;;  %v1698_v7 = vld [vmem:[%s2164_s3 + $0x18] sm:$0xff]  ;;  %vm243_vm2 = vcmask 177152   ;;  %s2034_s18 = smov 3  }
  0x38   : > { %197 = vst.msk [vmem:[#allocation2] sm:$0xff] %vm196_vm0, %v2033_v1  ;;  %198 = vst.msk [vmem:[#allocation2 + $0x8] sm:$0xff] %vm196_vm0, %v2033_v1  ;;  %v1699_v12 = vld [vmem:[%s2164_s3 + $0x20] sm:$0xff]  ;;  %v1700_v14 = vld [vmem:[%s2164_s3 + $0x28] sm:$0xff]  ;;  %s1703_s19 = sld [smem:[#allocation6 + $0x31]]  ;;  %vm258_vm3 = vcmask 154648  }
  0x39   : > { %245 = vst.msk [vmem:[#allocation5] sm:$0xff] %vm240_vm1, %v2033_v1  ;;  %246 = vst.msk [vmem:[#allocation5 + $0x8] sm:$0xff] %vm240_vm1, %v2033_v1  ;;  %v1701_v18 = vld [vmem:[%s2164_s3 + $0x30] sm:$0xff]  ;;  %v1702_v20 = vld [vmem:[%s2164_s3 + $0x38] sm:$0xff]  ;;  %s277_s22 = sld [smem:[#allocation6]]  ;;  %s2035_s7 = smov 127  }
  0x3a   : > { %241 = vst.msk [vmem:[#allocation4] sm:$0xff] %vm240_vm1, %v2033_v1  ;;  %242 = vst.msk [vmem:[#allocation4 + $0x8] sm:$0xff] %vm240_vm1, %v2033_v1  ;;  %s1704_s24 = sld [smem:[#allocation6 + $0x1]]  ;;  %s2036_s27 = smov 126  }
  0x3b   : > { %247 = vst.msk [vmem:[#allocation5 + $0x10] sm:$0x3f] %vm243_vm2, %v2033_v1  ;;  %244 = vst.msk [vmem:[#allocation4 + $0x10] sm:$0x3f] %vm243_vm2, %v2033_v1  ;;  %s2186_s4 = sld [smem:[#allocation6 + $0x32]]  ;;  %s2037_s26 = smov 125  }
  0x3c   : > { %s1706_s5 = sld [smem:[#allocation6 + $0x2]]  ;;  %s2038_s30 = smov 124  }
  0x3d   : > { %s1707_s6 = sld [smem:[#allocation6 + $0x33]] }
  0x3e   : > { %v203_v5 = vld [vmem:[#allocation3] sm:$0xff]  ;;  %v204_v6 = vld [vmem:[#allocation3 + $0x8] sm:$0xff]  ;;  %v284_v38 = vstv %s1703_s19  ;;  %s1708_s8 = sld [smem:[#allocation6 + $0x3]]  ;;  %s2039_s19 = smov 123  }
  0x3f   : > { %v209_v8 = vmax.f32 %v203_v5, %v205_v2  ;;  %v201_v9 = vld [vmem:[#allocation2] sm:$0xff]  ;;  %v210_v10 = vmax.f32 %v204_v6, %v206_v3  ;;  %v202_v11 = vld [vmem:[#allocation2 + $0x8] sm:$0xff]  ;;  %v279_v39 = vstv %s277_s22  ;;  %s1709_s16 = sld [smem:[#allocation6 + $0x34]] }
  0x40   : > { %v207_v13 = vadd.f32 %v205_v2, %v201_v9  ;;  %v208_v15 = vadd.f32 %v206_v3, %v202_v11  ;;  %v291_v40 = vstv %s1704_s24  ;;  %s1710_s28 = sld [smem:[#allocation6 + $0x4]] }
  0x41   : > { %v216_v16 = vmax.f32 %v209_v8, %v1697_v4  ;;  %v217_v17 = vmax.f32 %v210_v10, %v1698_v7  ;;  %v304_v44 = vstv %s2186_s4  ;;  %s1711_s29 = sld [smem:[#allocation6 + $0x35]]  ;;  %s2040_s4 = smov 122  }
  0x42   : > { %v214_v19 = vadd.f32 %v1697_v4, %v207_v13  ;;  %v215_v21 = vadd.f32 %v1698_v7, %v208_v15  ;;  %v319_v54 = vstv %s1706_s5  ;;  %s1712_s17 = sld [smem:[#allocation6 + $0x5]] }
  0x43   : > { %v223_v22 = vmax.f32 %v216_v16, %v1699_v12  ;;  %v224_v23 = vmax.f32 %v217_v17, %v1700_v14  ;;  %v332_v58 = vstv %s1707_s6  ;;  %s1713_s23 = sld [smem:[#allocation6 + $0x36]] }
  0x44   : > { %v221_v24 = vadd.f32 %v1699_v12, %v214_v19  ;;  %v222_v25 = vadd.f32 %v1700_v14, %v215_v21  ;;  %v347_v61 = vstv %s1708_s8  ;;  %s1714_s3 = sld [smem:[#allocation6 + $0x6]] }
  0x45   : > { %v230_v26 = vmax.f32 %v223_v22, %v1701_v18  ;;  %v231_v27 = vmax.f32 %v224_v23, %v1702_v20  ;;  %v360_v0 = vstv %s1709_s16  ;;  %s1718_s22 = sld [smem:[#allocation6 + $0x8]] }
  0x46   : > { %v228_v28 = vadd.f32 %v1701_v18, %v221_v24  ;;  %v229_v29 = vadd.f32 %v1702_v20, %v222_v25  ;;  %v375_v3 = vstv %s1710_s28  ;;  %s1719_s24 = sld [smem:[#allocation6 + $0x39]] }
  0x47   : > { %235 = vst.msk [vmem:[#allocation3] sm:$0xff] %vm196_vm0, %v230_v26  ;;  %236 = vst.msk [vmem:[#allocation3 + $0x8] sm:$0xff] %vm196_vm0, %v231_v27  ;;  %v388_v6 = vstv %s1711_s29  ;;  %s1720_s5 = sld [smem:[#allocation6 + $0x9]] }
  0x48   : > { %233 = vst.msk [vmem:[#allocation2] sm:$0xff] %vm196_vm0, %v228_v28  ;;  %234 = vst.msk [vmem:[#allocation2 + $0x8] sm:$0xff] %vm196_vm0, %v229_v29  ;;  %v403_v9 = vstv %s1712_s17  ;;  %s1721_s6 = sld [smem:[#allocation6 + $0x3a]] }
  0x49   : > { %v416_v12 = vstv %s1713_s23  ;;  %s1722_s8 = sld [smem:[#allocation6 + $0xa]] }
  0x4a   : > { %v431_v15 = vstv %s1714_s3  ;;  %s1723_s16 = sld [smem:[#allocation6 + $0x3b]] }
  0x4b   : > { %v475_v22 = vstv %s1718_s22  ;;  %s1724_s28 = sld [smem:[#allocation6 + $0xb]] }
  0x4c   : > { %v488_v27 = vstv %s1719_s24  ;;  %s1725_s29 = sld [smem:[#allocation6 + $0x3c]] }
  0x4d   : > { %s1726_s17 = sld [smem:[#allocation6 + $0xc]] }
  0x4e   : > { %v261_v30 = vld [vmem:[#allocation3] sm:$0xff]  ;;  %v262_v32 = vld [vmem:[#allocation3 + $0x8] sm:$0xff]  ;;  %s1727_s23 = sld [smem:[#allocation6 + $0x3d]] }
  0x4f   : > { %265 = vrot.lane.b32.xlu1 %v261_v30, %s2034_s18  ;;  %v248_v31 = vld [vmem:[#allocation2] sm:$0xff]  ;;  %v249_v33 = vld [vmem:[#allocation2 + $0x8] sm:$0xff]  ;;  %s1728_s3 = sld [smem:[#allocation6 + $0xd]] }
  0x50   : > { %252 = vrot.lane.b32.xlu0 %v248_v31, %s2034_s18  ;;  %v503_v31 = vstv %s1720_s5  ;;  %s1732_s22 = sld [smem:[#allocation6 + $0xf]] }
  0x51   : > { %s1733_s24 = sld [smem:[#allocation6 + $0x40]] }
  0x52   : > { %s1734_s5 = sld [smem:[#allocation6 + $0x10]] }
  0x53   : > { %267 = vrot.lane.b32.xlu1 %v262_v32, %s2034_s18 }
  0x54   : > { %254 = vrot.lane.b32.xlu0 %v249_v33, %s2034_s18  ;;  %s1715_s18 = sld [smem:[#allocation6 + $0x37]] }
  0x5a   : > { %v444_v18 = vstv %s1715_s18  ;;  %s1729_s18 = sld [smem:[#allocation6 + $0x3e]] }
  0xc1   : > { %v266_v34 = vpop.permute.xlu1 %265 }
  0xc2   : > { %271 = vst.msk [vmem:[#allocation5 + $0x3] sm:$0xff] %vm258_vm3, %v266_v34  ;;  %v253_v35 = vpop.permute.xlu0 %252  ;;  %v516_v34 = vstv %s1721_s6  ;;  %s1735_s6 = sld [smem:[#allocation6 + $0x41]] }
  0xc3   : > { %259 = vst.msk [vmem:[#allocation4 + $0x3] sm:$0xff] %vm258_vm3, %v253_v35 }
  0xc5   : > { %v268_v36 = vpop.permute.xlu1 %267 }
  0xc6   : > { %272 = vst.msk [vmem:[#allocation5 + $0xb] sm:$0xff] %vm258_vm3, %v268_v36  ;;  %v255_v37 = vpop.permute.xlu0 %254 }
  0xc7   : > { %260 = vst.msk [vmem:[#allocation4 + $0xb] sm:$0xff] %vm258_vm3, %v255_v37  ;;  %v531_v37 = vstv %s1722_s8  ;;  %s1736_s8 = sld [smem:[#allocation6 + $0x11]] }
  0xc9   : > { %v2188_v41 = vld [vmem:[#allocation5] sm:$0xff] }
  0xca   : > { %v285_v42 = vmul.f32 %v284_v38, %v2188_v41  ;;  %v2191_v43 = vld [vmem:[#allocation4] sm:$0xff]  ;;  %v305_v49 = vmul.f32 %v304_v44, %v2188_v41  ;;  %v333_v59 = vmul.f32 %v332_v58, %v2188_v41  ;;  %v361_v1 = vmul.f32 %v360_v0, %v2188_v41 }
  0xcb   : > { %v280_v45 = vmul.f32 %v279_v39, %v2191_v43  ;;  %v292_v46 = vmul.f32 %v291_v40, %v2191_v43  ;;  %v320_v56 = vmul.f32 %v319_v54, %v2191_v43  ;;  %v348_v62 = vmul.f32 %v347_v61, %v2191_v43  ;;  %v2249_v21 = vld [vmem:[#allocation4 + $0x1] sm:$0xff]  ;;  %v2255_v25 = vld [vmem:[#allocation5 + $0x1] sm:$0xff] }
  0xcc   : > { %v376_v4 = vmul.f32 %v375_v3, %v2191_v43  ;;  %v389_v7 = vmul.f32 %v388_v6, %v2188_v41  ;;  %v404_v10 = vmul.f32 %v403_v9, %v2191_v43  ;;  %v417_v13 = vmul.f32 %v416_v12, %v2188_v41 }
  0xcd   : > { %v2196_v47 = vadd.f32 %v285_v42, %v280_v45  ;;  %v2198_v48 = vld [vmem:[#allocation5 + $0x8] sm:$0xff]  ;;  %296 = vrot.lane.b32.xlu0 %v292_v46, %s2035_s7  ;;  %v432_v16 = vmul.f32 %v431_v15, %v2191_v43  ;;  %v445_v19 = vmul.f32 %v444_v18, %v2188_v41  ;;  %v476_v23 = vmul.f32 %v475_v22, %v2249_v21 }
  0xce   : > { %v286_v50 = vmul.f32 %v284_v38, %v2198_v48  ;;  %v2203_v51 = vld [vmem:[#allocation4 + $0x8] sm:$0xff]  ;;  %v306_v57 = vmul.f32 %v304_v44, %v2198_v48  ;;  %v334_v63 = vmul.f32 %v332_v58, %v2198_v48  ;;  %v362_v5 = vmul.f32 %v360_v0, %v2198_v48 }
  0xcf   : > { %v281_v52 = vmul.f32 %v279_v39, %v2203_v51  ;;  %v293_v53 = vmul.f32 %v291_v40, %v2203_v51  ;;  %v321_v60 = vmul.f32 %v319_v54, %v2203_v51  ;;  %v349_v2 = vmul.f32 %v347_v61, %v2203_v51  ;;  %v2257_v26 = vld [vmem:[#allocation4 + $0x9] sm:$0xff]  ;;  %v2263_v30 = vld [vmem:[#allocation5 + $0x9] sm:$0xff] }
  0xd0   : > { %v377_v8 = vmul.f32 %v375_v3, %v2203_v51  ;;  %v390_v11 = vmul.f32 %v388_v6, %v2198_v48  ;;  %v405_v14 = vmul.f32 %v403_v9, %v2203_v51  ;;  %v418_v17 = vmul.f32 %v416_v12, %v2198_v48  ;;  %v2311_v3 = vld [vmem:[#allocation5 + $0x2] sm:$0xff] }
  0xd1   : > { %v2207_v55 = vadd.f32 %v286_v50, %v281_v52  ;;  %309 = vrot.lane.b32.xlu0 %v305_v49, %s2035_s7  ;;  %298 = vrot.lane.b32.xlu1 %v293_v53, %s2035_s7  ;;  %v433_v20 = vmul.f32 %v431_v15, %v2203_v51  ;;  %v446_v24 = vmul.f32 %v444_v18, %v2198_v48  ;;  %v544_v40 = vstv %s1723_s16  ;;  %s1737_s16 = sld [smem:[#allocation6 + $0x42]] }
  0xd2   : > { %v489_v28 = vmul.f32 %v488_v27, %v2255_v25  ;;  %v477_v29 = vmul.f32 %v475_v22, %v2257_v26  ;;  %v504_v32 = vmul.f32 %v503_v31, %v2249_v21  ;;  %v490_v33 = vmul.f32 %v488_v27, %v2263_v30 }
  0xd3   : > { %v517_v35 = vmul.f32 %v516_v34, %v2255_v25  ;;  %v505_v36 = vmul.f32 %v503_v31, %v2257_v26  ;;  %v532_v38 = vmul.f32 %v531_v37, %v2249_v21  ;;  %v518_v39 = vmul.f32 %v516_v34, %v2263_v30 }
  0xd4   : > { %v545_v41 = vmul.f32 %v544_v40, %v2255_v25  ;;  %v533_v42 = vmul.f32 %v531_v37, %v2257_v26  ;;  %v559_v43 = vstv %s1724_s28  ;;  %v546_v45 = vmul.f32 %v544_v40, %v2263_v30  ;;  %s1738_s28 = sld [smem:[#allocation6 + $0x12]] }
  0xd5   : > { %324 = vrot.lane.b32.xlu0 %v320_v56, %s2036_s27  ;;  %311 = vrot.lane.b32.xlu1 %v306_v57, %s2035_s7  ;;  %v560_v44 = vmul.f32 %v559_v43, %v2249_v21  ;;  %v572_v46 = vstv %s1725_s29  ;;  %v561_v49 = vmul.f32 %v559_v43, %v2257_v26  ;;  %v587_v50 = vstv %s1726_s17  ;;  %s1739_s29 = sld [smem:[#allocation6 + $0x43]] }
  0xd6   : > { %v573_v48 = vmul.f32 %v572_v46, %v2255_v25  ;;  %v588_v51 = vmul.f32 %v587_v50, %v2249_v21  ;;  %v574_v52 = vmul.f32 %v572_v46, %v2263_v30  ;;  %v600_v53 = vstv %s1727_s23  ;;  %s1740_s17 = sld [smem:[#allocation6 + $0x13]] }
  0xd7   : > { %v601_v54 = vmul.f32 %v600_v53, %v2255_v25  ;;  %v589_v56 = vmul.f32 %v587_v50, %v2257_v26  ;;  %v615_v57 = vstv %s1728_s3  ;;  %v659_v0 = vstv %s1732_s22  ;;  %s1741_s23 = sld [smem:[#allocation6 + $0x44]] }
  0xd8   : > { %v616_v58 = vmul.f32 %v615_v57, %v2249_v21  ;;  %v687_v9 = vstv %s1734_s5  ;;  %v700_v12 = vstv %s1735_s6  ;;  %v715_v15 = vstv %s1736_s8  ;;  %s2345_s3 = sld [smem:[#allocation6 + $0x14]] }
  0xd9   : > { %337 = vrot.lane.b32.xlu0 %v333_v59, %s2036_s27  ;;  %326 = vrot.lane.b32.xlu1 %v321_v60, %s2036_s27  ;;  %v602_v59 = vmul.f32 %v600_v53, %v2263_v30  ;;  %v628_v60 = vstv %s1729_s18  ;;  %v728_v18 = vstv %s1737_s16  ;;  %s2351_s18 = sld [smem:[#allocation6 + $0x45]] }
  0xda   : > { %v629_v61 = vmul.f32 %v628_v60, %v2255_v25  ;;  %s2358_s22 = sld [smem:[#allocation6 + $0x16]] }
  0xdb   : > { %v756_v31 = vstv %s1739_s29  ;;  %s2375_s5 = sld [smem:[#allocation6 + $0x17]] }
  0xdc   : > { %v757_v34 = vmul.f32 %v756_v31, %v2311_v3  ;;  %s2387_s6 = sld [smem:[#allocation6 + $0x48]] }
  0xdd   : > { %352 = vrot.lane.b32.xlu0 %v348_v62, %s2037_s26  ;;  %339 = vrot.lane.b32.xlu1 %v334_v63, %s2036_s27  ;;  %v617_v62 = vmul.f32 %v615_v57, %v2257_v26  ;;  %v2305_v63 = vld [vmem:[#allocation4 + $0x2] sm:$0xff]  ;;  %s2396_s8 = sld [smem:[#allocation6 + $0x18]] }
  0xde   : > { %v799_v46 = vstv %s2345_s3  ;;  %s2398_s16 = sld [smem:[#allocation6 + $0x7]] }
  0xdf   : > { %v800_v50 = vmul.f32 %v799_v46, %v2305_v63  ;;  %s2407_s29 = sld [smem:[#allocation6 + $0x49]] }
  0xe0   : > { %s2433_s3 = sld [smem:[#allocation6 + $0x1a]] }
  0xe1   : > { %365 = vrot.lane.b32.xlu0 %v361_v1, %s2037_s26  ;;  %354 = vrot.lane.b32.xlu1 %v349_v2, %s2037_s26  ;;  %v660_v1 = vmul.f32 %v659_v0, %v2305_v63  ;;  %v630_v2 = vmul.f32 %v628_v60, %v2263_v30 }
  0xe5   : > { %380 = vrot.lane.b32.xlu0 %v376_v4, %s2038_s30  ;;  %367 = vrot.lane.b32.xlu1 %v362_v5, %s2037_s26  ;;  %v2313_v4 = vld [vmem:[#allocation4 + $0xa] sm:$0xff]  ;;  %v672_v5 = vstv %s1733_s24  ;;  %s2365_s24 = sld [smem:[#allocation6 + $0x47]] }
  0xe6   : > { %v673_v6 = vmul.f32 %v672_v5, %v2311_v3  ;;  %v717_v22 = vmul.f32 %v715_v15, %v2313_v4 }
  0xe9   : > { %393 = vrot.lane.b32.xlu0 %v389_v7, %s2038_s30  ;;  %382 = vrot.lane.b32.xlu1 %v377_v8, %s2038_s30  ;;  %v661_v7 = vmul.f32 %v659_v0, %v2313_v4  ;;  %v2319_v8 = vld [vmem:[#allocation5 + $0xa] sm:$0xff] }
  0xea   : > { %v758_v40 = vmul.f32 %v756_v31, %v2319_v8 }
  0xed   : > { %408 = vrot.lane.b32.xlu0 %v404_v10, %s2039_s19  ;;  %395 = vrot.lane.b32.xlu1 %v390_v11, %s2038_s30  ;;  %v688_v10 = vmul.f32 %v687_v9, %v2305_v63  ;;  %v674_v11 = vmul.f32 %v672_v5, %v2319_v8 }
  0xf1   : > { %421 = vrot.lane.b32.xlu0 %v417_v13, %s2039_s19  ;;  %410 = vrot.lane.b32.xlu1 %v405_v14, %s2039_s19  ;;  %v701_v13 = vmul.f32 %v700_v12, %v2311_v3  ;;  %v689_v14 = vmul.f32 %v687_v9, %v2313_v4 }
  0xf5   : > { %436 = vrot.lane.b32.xlu0 %v432_v16, %s2040_s4  ;;  %423 = vrot.lane.b32.xlu1 %v418_v17, %s2039_s19  ;;  %v716_v16 = vmul.f32 %v715_v15, %v2305_v63  ;;  %v702_v17 = vmul.f32 %v700_v12, %v2319_v8 }
  0xf9   : > { %449 = vrot.lane.b32.xlu0 %v445_v19, %s2040_s4  ;;  %438 = vrot.lane.b32.xlu1 %v433_v20, %s2040_s4  ;;  %v729_v20 = vmul.f32 %v728_v18, %v2311_v3 }
  0xfd   : > { %480 = vrot.lane.b32.xlu0 %v476_v23, %s2035_s7  ;;  %451 = vrot.lane.b32.xlu1 %v446_v24, %s2040_s4  ;;  %v743_v23 = vstv %s1738_s28  ;;  %s2402_s28 = sld [smem:[#allocation6 + $0x38]] }
 0x101   : > { %493 = vrot.lane.b32.xlu0 %v489_v28, %s2035_s7  ;;  %482 = vrot.lane.b32.xlu1 %v477_v29, %s2035_s7  ;;  %v744_v28 = vmul.f32 %v743_v23, %v2305_v63  ;;  %v730_v29 = vmul.f32 %v728_v18, %v2319_v8 }
 0x105   : > { %508 = vrot.lane.b32.xlu0 %v504_v32, %s2036_s27  ;;  %495 = vrot.lane.b32.xlu1 %v490_v33, %s2035_s7 }
 0x109   : > { %521 = vrot.lane.b32.xlu0 %v517_v35, %s2036_s27  ;;  %510 = vrot.lane.b32.xlu1 %v505_v36, %s2036_s27  ;;  %v745_v35 = vmul.f32 %v743_v23, %v2313_v4  ;;  %v771_v36 = vstv %s1740_s17  ;;  %s2414_s17 = sld [smem:[#allocation6 + $0x19]] }
 0x10d   : > { %536 = vrot.lane.b32.xlu0 %v532_v38, %s2037_s26  ;;  %523 = vrot.lane.b32.xlu1 %v518_v39, %s2036_s27  ;;  %v772_v39 = vmul.f32 %v771_v36, %v2305_v63 }
 0x111   : > { %549 = vrot.lane.b32.xlu0 %v545_v41, %s2037_s26  ;;  %538 = vrot.lane.b32.xlu1 %v533_v42, %s2037_s26  ;;  %v784_v41 = vstv %s1741_s23  ;;  %s2424_s23 = sld [smem:[#allocation6 + $0x4a]] }
 0x115   : > { %564 = vrot.lane.b32.xlu0 %v560_v44, %s2038_s30  ;;  %551 = vrot.lane.b32.xlu1 %v546_v45, %s2037_s26  ;;  %v785_v44 = vmul.f32 %v784_v41, %v2311_v3  ;;  %v773_v45 = vmul.f32 %v771_v36, %v2313_v4 }
 0x119   : > { %577 = vrot.lane.b32.xlu0 %v573_v48, %s2038_s30  ;;  %566 = vrot.lane.b32.xlu1 %v561_v49, %s2038_s30 }
 0x11d   : > { %592 = vrot.lane.b32.xlu0 %v588_v51, %s2039_s19  ;;  %579 = vrot.lane.b32.xlu1 %v574_v52, %s2038_s30  ;;  %v786_v51 = vmul.f32 %v784_v41, %v2319_v8  ;;  %v812_v52 = vstv %s2351_s18  ;;  %s1755_s18 = sld [smem:[#allocation6 + $0x4b]] }
 0x11e   : > { %v813_v57 = vmul.f32 %v812_v52, %v2311_v3  ;;  %v814_v5 = vmul.f32 %v812_v52, %v2319_v8 }
 0x121   : > { %605 = vrot.lane.b32.xlu0 %v601_v54, %s2039_s19  ;;  %594 = vrot.lane.b32.xlu1 %v589_v56, %s2039_s19 }
 0x125   : > { %620 = vrot.lane.b32.xlu0 %v616_v58, %s2040_s4  ;;  %607 = vrot.lane.b32.xlu1 %v602_v59, %s2039_s19  ;;  %v801_v58 = vmul.f32 %v799_v46, %v2313_v4  ;;  %v2372_v59 = vld [vmem:[#allocation4 + $0x3] sm:$0xff]  ;;  %v468_v46 = vstv %s2402_s28  ;;  %s2495_s28 = sld [smem:[#allocation6 + $0x1f]] }
 0x129   : > { %633 = vrot.lane.b32.xlu0 %v629_v61, %s2040_s4  ;;  %622 = vrot.lane.b32.xlu1 %v617_v62, %s2040_s4  ;;  %v843_v61 = vstv %s2358_s22  ;;  %s2446_s22 = sld [smem:[#allocation6 + $0x1b]] }
 0x12d   : > { %664 = vrot.lane.b32.xlu0 %v660_v1, %s2035_s7  ;;  %635 = vrot.lane.b32.xlu1 %v630_v2, %s2040_s4  ;;  %v844_v2 = vmul.f32 %v843_v61, %v2372_v59 }
 0x131   : > { %677 = vrot.lane.b32.xlu0 %v673_v6, %s2035_s7  ;;  %666 = vrot.lane.b32.xlu1 %v661_v7, %s2035_s7  ;;  %v2382_v6 = vld [vmem:[#allocation4 + $0xb] sm:$0xff] }
 0x135   : > { %692 = vrot.lane.b32.xlu0 %v688_v10, %s2036_s27  ;;  %679 = vrot.lane.b32.xlu1 %v674_v11, %s2035_s7  ;;  %v2384_v10 = vld [vmem:[#allocation5 + $0x3] sm:$0xff]  ;;  %v856_v11 = vstv %s2365_s24  ;;  %s2452_s24 = sld [smem:[#allocation6 + $0x4c]] }
 0x136   : > { %v857_v15 = vmul.f32 %v856_v11, %v2384_v10 }
 0x139   : > { %705 = vrot.lane.b32.xlu0 %v701_v13, %s2036_s27  ;;  %694 = vrot.lane.b32.xlu1 %v689_v14, %s2036_s27 }
 0x13d   : > { %720 = vrot.lane.b32.xlu0 %v716_v16, %s2037_s26  ;;  %707 = vrot.lane.b32.xlu1 %v702_v17, %s2036_s27  ;;  %v845_v16 = vmul.f32 %v843_v61, %v2382_v6 }
 0x13f   : > { %v297_v19 = vpop.permute.xlu0 %296 }
 0x140   : > { %v302_v53 = vadd.f32 %v297_v19, %v2196_v47  ;;  %v871_v19 = vstv %s2375_s5  ;;  %s2459_s5 = sld [smem:[#allocation6 + $0x1d]] }
 0x141   : > { %733 = vrot.lane.b32.xlu0 %v729_v20, %s2037_s26  ;;  %722 = vrot.lane.b32.xlu1 %v717_v22, %s2037_s26  ;;  %v2394_v20 = vld [vmem:[#allocation5 + $0xb] sm:$0xff] }
 0x143   : > { %v299_v24 = vpop.permute.xlu1 %298  ;;  %v310_v27 = vpop.permute.xlu0 %309 }
 0x144   : > { %v315_v60 = vadd.f32 %v310_v27, %v302_v53  ;;  %v303_v62 = vadd.f32 %v299_v24, %v2207_v55 }
 0x145   : > { %748 = vrot.lane.b32.xlu0 %v744_v28, %s2038_s30  ;;  %735 = vrot.lane.b32.xlu1 %v730_v29, %s2037_s26  ;;  %v872_v28 = vmul.f32 %v871_v19, %v2372_v59  ;;  %v858_v29 = vmul.f32 %v856_v11, %v2394_v20 }
 0x147   : > { %v312_v32 = vpop.permute.xlu1 %311  ;;  %v325_v33 = vpop.permute.xlu0 %324 }
 0x148   : > { %v330_v47 = vadd.f32 %v325_v33, %v315_v60  ;;  %v316_v7 = vadd.f32 %v312_v32, %v303_v62  ;;  %v884_v33 = vstv %s2387_s6  ;;  %s2466_s6 = sld [smem:[#allocation6 + $0x4e]] }
 0x149   : > { %761 = vrot.lane.b32.xlu0 %v757_v34, %s2038_s30  ;;  %750 = vrot.lane.b32.xlu1 %v745_v35, %s2038_s30 }
 0x14b   : > { %v327_v37 = vpop.permute.xlu1 %326  ;;  %v338_v38 = vpop.permute.xlu0 %337 }
 0x14c   : > { %v343_v9 = vadd.f32 %v338_v38, %v330_v47  ;;  %v331_v55 = vadd.f32 %v327_v37, %v316_v7  ;;  %v885_v38 = vmul.f32 %v884_v33, %v2384_v10 }
 0x14d   : > { %776 = vrot.lane.b32.xlu0 %v772_v39, %s2039_s19  ;;  %763 = vrot.lane.b32.xlu1 %v758_v40, %s2038_s30  ;;  %v873_v39 = vmul.f32 %v871_v19, %v2382_v6 }
 0x14f   : > { %v340_v42 = vpop.permute.xlu1 %339  ;;  %v353_v43 = vpop.permute.xlu0 %352 }
 0x150   : > { %v358_v12 = vadd.f32 %v353_v43, %v343_v9  ;;  %v344_v17 = vadd.f32 %v340_v42, %v331_v55  ;;  %v899_v42 = vstv %s2396_s8  ;;  %v463_v43 = vstv %s2398_s16  ;;  %s2475_s8 = sld [smem:[#allocation6 + $0x1e]] }
 0x151   : > { %789 = vrot.lane.b32.xlu0 %v785_v44, %s2039_s19  ;;  %778 = vrot.lane.b32.xlu1 %v773_v45, %s2039_s19  ;;  %v464_v52 = vmul.f32 %v463_v43, %v2249_v21  ;;  %v901_v21 = vmul.f32 %v899_v42, %v2382_v6  ;;  %s2486_s16 = sld [smem:[#allocation6 + $0x4f]] }
 0x153   : > { %v355_v48 = vpop.permute.xlu1 %354  ;;  %v366_v49 = vpop.permute.xlu0 %365 }
 0x154   : > { %v371_v18 = vadd.f32 %v366_v49, %v358_v12  ;;  %v359_v22 = vadd.f32 %v355_v48, %v344_v17  ;;  %v955_v17 = vstv %s2433_s3  ;;  %s2513_s3 = sld [smem:[#allocation6 + $0x20]] }
 0x155   : > { %804 = vrot.lane.b32.xlu0 %v800_v50, %s2040_s4  ;;  %791 = vrot.lane.b32.xlu1 %v786_v51, %s2039_s19  ;;  %v900_v50 = vmul.f32 %v899_v42, %v2372_v59  ;;  %v886_v51 = vmul.f32 %v884_v33, %v2394_v20 }
 0x157   : > { %v368_v54 = vpop.permute.xlu1 %367  ;;  %v381_v56 = vpop.permute.xlu0 %380 }
 0x158   : > { %v386_v23 = vadd.f32 %v381_v56, %v371_v18  ;;  %v372_v31 = vadd.f32 %v368_v54, %v359_v22  ;;  %v912_v56 = vstv %s2407_s29  ;;  %v956_v22 = vmul.f32 %v955_v17, %v2372_v59  ;;  %s2497_s29 = sld [smem:[#allocation6 + $0xe]] }
 0x159   : > { %817 = vrot.lane.b32.xlu0 %v813_v57, %s2040_s4  ;;  %806 = vrot.lane.b32.xlu1 %v801_v58, %s2040_s4  ;;  %v469_v57 = vmul.f32 %v468_v46, %v2255_v25  ;;  %v913_v47 = vmul.f32 %v912_v56, %v2384_v10  ;;  %v470_v25 = vmul.f32 %v468_v46, %v2263_v30  ;;  %v1027_v46 = vstv %s2459_s5  ;;  %s1770_s5 = sld [smem:[#allocation6 + $0x22]] }
 0x15a   : > { %v914_v12 = vmul.f32 %v912_v56, %v2394_v20  ;;  %v2481_v56 = vld [vmem:[#allocation4 + $0xc] sm:$0xff] }
 0x15b   : > { %v383_v0 = vpop.permute.xlu1 %382  ;;  %v394_v1 = vpop.permute.xlu0 %393 }
 0x15c   : > { %v399_v32 = vadd.f32 %v394_v1, %v386_v23  ;;  %v387_v34 = vadd.f32 %v383_v0, %v372_v31  ;;  %v465_v0 = vmul.f32 %v463_v43, %v2257_v26  ;;  %v957_v31 = vmul.f32 %v955_v17, %v2382_v6 }
 0x15d   : > { %848 = vrot.lane.b32.xlu0 %v844_v2, %s2035_s7  ;;  %819 = vrot.lane.b32.xlu1 %v814_v5, %s2040_s4  ;;  %v927_v5 = vstv %s2414_s17  ;;  %s2501_s17 = sld [smem:[#allocation6 + $0x3f]] }
 0x15e   : > { %v928_v55 = vmul.f32 %v927_v5, %v2372_v59  ;;  %v929_v30 = vmul.f32 %v927_v5, %v2382_v6  ;;  %v2492_v5 = vld [vmem:[#allocation5 + $0xc] sm:$0xff] }
 0x15f   : > { %v396_v13 = vpop.permute.xlu1 %395  ;;  %v409_v14 = vpop.permute.xlu0 %408 }
 0x160   : > { %v414_v35 = vadd.f32 %v409_v14, %v399_v32  ;;  %v400_v40 = vadd.f32 %v396_v13, %v387_v34  ;;  %v940_v13 = vstv %s2424_s23  ;;  %v983_v32 = vstv %s2446_s22  ;;  %s2506_s23 = sld [smem:[#allocation6 + $0x50]] }
 0x161   : > { %861 = vrot.lane.b32.xlu0 %v857_v15, %s2035_s7  ;;  %850 = vrot.lane.b32.xlu1 %v845_v16, %s2035_s7  ;;  %v941_v16 = vmul.f32 %v940_v13, %v2384_v10  ;;  %v942_v23 = vmul.f32 %v940_v13, %v2394_v20  ;;  %v985_v42 = vmul.f32 %v983_v32, %v2382_v6  ;;  %s2532_s22 = sld [smem:[#allocation6 + $0x21]] }
 0x163   : > { %v411_v24 = vpop.permute.xlu1 %410  ;;  %v422_v27 = vpop.permute.xlu0 %421 }
 0x164   : > { %v427_v41 = vadd.f32 %v422_v27, %v414_v35  ;;  %v415_v44 = vadd.f32 %v411_v24, %v400_v40  ;;  %v968_v24 = vstv %s1755_s18  ;;  %v984_v35 = vmul.f32 %v983_v32, %v2372_v59  ;;  %s2523_s18 = sld [smem:[#allocation6 + $0x51]] }
 0x165   : > { %876 = vrot.lane.b32.xlu0 %v872_v28, %s2036_s27  ;;  %863 = vrot.lane.b32.xlu1 %v858_v29, %s2035_s7  ;;  %v969_v29 = vmul.f32 %v968_v24, %v2384_v10  ;;  %v652_v32 = vstv %s2501_s17  ;;  %s2591_s17 = sld [smem:[#allocation6 + $0x26]] }
 0x167   : > { %v424_v36 = vpop.permute.xlu1 %423  ;;  %v437_v37 = vpop.permute.xlu0 %436 }
 0x168   : > { %v442_v45 = vadd.f32 %v437_v37, %v427_v41  ;;  %v428_v53 = vadd.f32 %v424_v36, %v415_v44  ;;  %v970_v36 = vmul.f32 %v968_v24, %v2394_v20 }
 0x169   : > { %889 = vrot.lane.b32.xlu0 %v885_v38, %s2036_s27  ;;  %878 = vrot.lane.b32.xlu1 %v873_v39, %s2036_s27  ;;  %v996_v38 = vstv %s2452_s24  ;;  %s1769_s24 = sld [smem:[#allocation6 + $0x52]] }
 0x16a   : > { %v997_v41 = vmul.f32 %v996_v38, %v2384_v10 }
 0x16b   : > { %v439_v48 = vpop.permute.xlu1 %438  ;;  %v450_v49 = vpop.permute.xlu0 %449 }
 0x16c   : > { %v455_v54 = vadd.f32 %v450_v49, %v442_v45  ;;  %v443_v58 = vadd.f32 %v439_v48, %v428_v53  ;;  %v2472_v45 = vld [vmem:[#allocation4 + $0x4] sm:$0xff] }
 0x16d   : > { %904 = vrot.lane.b32.xlu0 %v900_v50, %s2037_s26  ;;  %891 = vrot.lane.b32.xlu1 %v886_v51, %s2036_s27  ;;  %v1028_v51 = vmul.f32 %v1027_v46, %v2472_v45 }
 0x16e   : > { %v466_v60 = vadd.f32 %v464_v52, %v455_v54  ;;  %v998_v52 = vmul.f32 %v996_v38, %v2394_v20 }
 0x16f   : > { %v452_v61 = vpop.permute.xlu1 %451  ;;  %v481_v62 = vpop.permute.xlu0 %480 }
 0x170   : > { %v471_v1 = vadd.f32 %v469_v57, %v466_v60  ;;  %v456_v2 = vadd.f32 %v452_v61, %v443_v58  ;;  %v2483_v57 = vld [vmem:[#allocation5 + $0x4] sm:$0xff]  ;;  %v1040_v58 = vstv %s2466_s6  ;;  %s2549_s6 = sld [smem:[#allocation6 + $0x53]] }
 0x171   : > { %917 = vrot.lane.b32.xlu0 %v913_v47, %s2037_s26  ;;  %906 = vrot.lane.b32.xlu1 %v901_v21, %s2037_s26  ;;  %v1029_v21 = vmul.f32 %v1027_v46, %v2481_v56 }
 0x172   : > { %v467_v7 = vadd.f32 %v465_v0, %v456_v2  ;;  %v486_v37 = vadd.f32 %v481_v62, %v471_v1  ;;  %v1041_v0 = vmul.f32 %v1040_v58, %v2483_v57 }
 0x173   : > { %v483_v9 = vpop.permute.xlu1 %482  ;;  %v494_v11 = vpop.permute.xlu0 %493 }
 0x174   : > { %v472_v26 = vadd.f32 %v470_v25, %v467_v7  ;;  %v499_v44 = vadd.f32 %v494_v11, %v486_v37  ;;  %v1055_v25 = vstv %s2475_s8  ;;  %s2555_s8 = sld [smem:[#allocation6 + $0x24]] }
 0x175   : > { %932 = vrot.lane.b32.xlu0 %v928_v55, %s2038_s30  ;;  %919 = vrot.lane.b32.xlu1 %v914_v12, %s2037_s26  ;;  %v1042_v12 = vmul.f32 %v1040_v58, %v2492_v5 }
 0x176   : > { %v487_v43 = vadd.f32 %v483_v9, %v472_v26  ;;  %v1056_v26 = vmul.f32 %v1055_v25, %v2472_v45 }
 0x177   : > { %v496_v14 = vpop.permute.xlu1 %495  ;;  %v509_v15 = vpop.permute.xlu0 %508 }
 0x178   : > { %v514_v48 = vadd.f32 %v509_v15, %v499_v44  ;;  %v500_v53 = vadd.f32 %v496_v14, %v487_v43  ;;  %v1068_v15 = vstv %s2486_s16  ;;  %s2562_s16 = sld [smem:[#allocation6 + $0x55]] }
 0x179   : > { %945 = vrot.lane.b32.xlu0 %v941_v16, %s2038_s30  ;;  %934 = vrot.lane.b32.xlu1 %v929_v30, %s2038_s30 }
 0x17b   : > { %v511_v18 = vpop.permute.xlu1 %510  ;;  %v522_v19 = vpop.permute.xlu0 %521 }
 0x17c   : > { %v527_v54 = vadd.f32 %v522_v19, %v514_v48  ;;  %v515_v60 = vadd.f32 %v511_v18, %v500_v53  ;;  %v1057_v19 = vmul.f32 %v1055_v25, %v2481_v56 }
 0x17d   : > { %960 = vrot.lane.b32.xlu0 %v956_v22, %s2039_s19  ;;  %947 = vrot.lane.b32.xlu1 %v942_v23, %s2038_s30  ;;  %v1069_v22 = vmul.f32 %v1068_v15, %v2483_v57 }
 0x17f   : > { %v524_v27 = vpop.permute.xlu1 %523  ;;  %v537_v28 = vpop.permute.xlu0 %536 }
 0x180   : > { %v542_v61 = vadd.f32 %v537_v28, %v527_v54  ;;  %v528_v1 = vadd.f32 %v524_v27, %v515_v60  ;;  %v1083_v27 = vstv %s2495_s28  ;;  %v647_v28 = vstv %s2497_s29  ;;  %s2571_s28 = sld [smem:[#allocation6 + $0x25]] }
 0x181   : > { %973 = vrot.lane.b32.xlu0 %v969_v29, %s2039_s19  ;;  %962 = vrot.lane.b32.xlu1 %v957_v31, %s2039_s19  ;;  %v648_v37 = vmul.f32 %v647_v28, %v2305_v63  ;;  %v1085_v48 = vmul.f32 %v1083_v27, %v2481_v56  ;;  %s2582_s29 = sld [smem:[#allocation6 + $0x56]] }
 0x183   : > { %v539_v33 = vpop.permute.xlu1 %538  ;;  %v550_v34 = vpop.permute.xlu0 %549 }
 0x184   : > { %v555_v2 = vadd.f32 %v550_v34, %v542_v61  ;;  %v543_v7 = vadd.f32 %v539_v33, %v528_v1  ;;  %v1139_v1 = vstv %s2532_s22  ;;  %s2609_s22 = sld [smem:[#allocation6 + $0x27]] }
 0x185   : > { %988 = vrot.lane.b32.xlu0 %v984_v35, %s2040_s4  ;;  %975 = vrot.lane.b32.xlu1 %v970_v36, %s2039_s19  ;;  %v1070_v35 = vmul.f32 %v1068_v15, %v2492_v5  ;;  %v1084_v36 = vmul.f32 %v1083_v27, %v2472_v45 }
 0x187   : > { %v552_v39 = vpop.permute.xlu1 %551  ;;  %v565_v40 = vpop.permute.xlu0 %564 }
 0x188   : > { %v570_v9 = vadd.f32 %v565_v40, %v555_v2  ;;  %v556_v13 = vadd.f32 %v552_v39, %v543_v7  ;;  %v1096_v40 = vstv %s2506_s23  ;;  %s2593_s23 = sld [smem:[#allocation6 + $0x15]] }
 0x189   : > { %1001 = vrot.lane.b32.xlu0 %v997_v41, %s2040_s4  ;;  %990 = vrot.lane.b32.xlu1 %v985_v42, %s2040_s4  ;;  %v653_v41 = vmul.f32 %v652_v32, %v2311_v3  ;;  %v1097_v63 = vmul.f32 %v1096_v40, %v2483_v57  ;;  %v654_v3 = vmul.f32 %v652_v32, %v2319_v8  ;;  %v1211_v32 = vstv %s2555_s8  ;;  %s2643_s8 = sld [smem:[#allocation6 + $0x29]] }
 0x18a   : > { %v1098_v60 = vmul.f32 %v1096_v40, %v2492_v5  ;;  %v2577_v40 = vld [vmem:[#allocation4 + $0xd] sm:$0xff] }
 0x18b   : > { %v567_v49 = vpop.permute.xlu1 %566  ;;  %v578_v50 = vpop.permute.xlu0 %577 }
 0x18c   : > { %v583_v14 = vadd.f32 %v578_v50, %v570_v9  ;;  %v571_v16 = vadd.f32 %v567_v49, %v556_v13  ;;  %v649_v49 = vmul.f32 %v647_v28, %v2313_v4  ;;  %v1140_v9 = vmul.f32 %v1139_v1, %v2472_v45 }
 0x18d   : > { %1032 = vrot.lane.b32.xlu0 %v1028_v51, %s2035_s7  ;;  %1003 = vrot.lane.b32.xlu1 %v998_v52, %s2040_s4  ;;  %v1111_v52 = vstv %s2513_s3  ;;  %s2599_s3 = sld [smem:[#allocation6 + $0x46]] }
 0x18e   : > { %v1112_v61 = vmul.f32 %v1111_v52, %v2472_v45 }
 0x18f   : > { %v580_v62 = vpop.permute.xlu1 %579  ;;  %v593_v47 = vpop.permute.xlu0 %592 }
 0x190   : > { %v598_v30 = vadd.f32 %v593_v47, %v583_v14  ;;  %v584_v23 = vadd.f32 %v580_v62, %v571_v16  ;;  %v1124_v62 = vstv %s2523_s18  ;;  %v1167_v14 = vstv %s1770_s5  ;;  %s2602_s18 = sld [smem:[#allocation6 + $0x57]] }
 0x191   : > { %1034 = vrot.lane.b32.xlu1 %v1029_v21, %s2035_s7  ;;  %1045 = vrot.lane.b32.xlu0 %v1041_v0, %s2035_s7  ;;  %v1113_v0 = vmul.f32 %v1111_v52, %v2481_v56  ;;  %v1125_v8 = vmul.f32 %v1124_v62, %v2483_v57  ;;  %v1126_v7 = vmul.f32 %v1124_v62, %v2492_v5  ;;  %v2588_v52 = vld [vmem:[#allocation5 + $0xd] sm:$0xff]  ;;  %s2628_s5 = sld [smem:[#allocation6 + $0x28]] }
 0x193   : > { %v595_v11 = vpop.permute.xlu1 %594  ;;  %v606_v55 = vpop.permute.xlu0 %605 }
 0x194   : > { %v611_v24 = vadd.f32 %v606_v55, %v598_v30  ;;  %v599_v29 = vadd.f32 %v595_v11, %v584_v23  ;;  %v1152_v11 = vstv %s1769_s24  ;;  %s2619_s24 = sld [smem:[#allocation6 + $0x58]] }
 0x195   : > { %1047 = vrot.lane.b32.xlu1 %v1042_v12, %s2035_s7  ;;  %1060 = vrot.lane.b32.xlu0 %v1056_v26, %s2036_s27  ;;  %v1141_v26 = vmul.f32 %v1139_v1, %v2481_v56  ;;  %v1153_v13 = vmul.f32 %v1152_v11, %v2483_v57  ;;  %v1154_v30 = vmul.f32 %v1152_v11, %v2492_v5 }
 0x197   : > { %v608_v17 = vpop.permute.xlu1 %607  ;;  %v621_v18 = vpop.permute.xlu0 %620 }
 0x198   : > { %v626_v31 = vadd.f32 %v621_v18, %v611_v24  ;;  %v612_v38 = vadd.f32 %v608_v17, %v599_v29  ;;  %v1168_v17 = vmul.f32 %v1167_v14, %v2472_v45  ;;  %v1169_v24 = vmul.f32 %v1167_v14, %v2481_v56 }
 0x199   : > { %1062 = vrot.lane.b32.xlu1 %v1057_v19, %s2036_s27  ;;  %1073 = vrot.lane.b32.xlu0 %v1069_v22, %s2036_s27  ;;  %v1180_v19 = vstv %s2549_s6  ;;  %s2636_s6 = sld [smem:[#allocation6 + $0x59]] }
 0x19a   : > { %v1181_v27 = vmul.f32 %v1180_v19, %v2483_v57 }
 0x19b   : > { %v623_v33 = vpop.permute.xlu1 %622  ;;  %v634_v34 = vpop.permute.xlu0 %633 }
 0x19c   : > { %v639_v39 = vadd.f32 %v634_v34, %v626_v31  ;;  %v627_v42 = vadd.f32 %v623_v33, %v612_v38  ;;  %v2568_v31 = vld [vmem:[#allocation4 + $0x5] sm:$0xff] }
 0x19d   : > { %1075 = vrot.lane.b32.xlu1 %v1070_v35, %s2036_s27  ;;  %1088 = vrot.lane.b32.xlu0 %v1084_v36, %s2037_s26  ;;  %v1182_v36 = vmul.f32 %v1180_v19, %v2492_v5 }
 0x19e   : > { %v650_v43 = vadd.f32 %v648_v37, %v639_v39  ;;  %v1212_v37 = vmul.f32 %v1211_v32, %v2568_v31 }
 0x19f   : > { %v636_v44 = vpop.permute.xlu1 %635  ;;  %v665_v46 = vpop.permute.xlu0 %664 }
 0x1a0   : > { %v655_v50 = vadd.f32 %v653_v41, %v650_v43  ;;  %v640_v51 = vadd.f32 %v636_v44, %v627_v42  ;;  %v2579_v41 = vld [vmem:[#allocation5 + $0x5] sm:$0xff]  ;;  %v1224_v42 = vstv %s2562_s16  ;;  %s2650_s16 = sld [smem:[#allocation6 + $0x5a]] }
 0x1a1   : > { %1090 = vrot.lane.b32.xlu1 %v1085_v48, %s2037_s26  ;;  %1101 = vrot.lane.b32.xlu0 %v1097_v63, %s2037_s26  ;;  %v1213_v63 = vmul.f32 %v1211_v32, %v2577_v40 }
 0x1a2   : > { %v651_v53 = vadd.f32 %v649_v49, %v640_v51  ;;  %v670_v18 = vadd.f32 %v665_v46, %v655_v50  ;;  %v1225_v49 = vmul.f32 %v1224_v42, %v2579_v41 }
 0x1a3   : > { %v667_v54 = vpop.permute.xlu1 %666  ;;  %v678_v58 = vpop.permute.xlu0 %677 }
 0x1a4   : > { %v656_v4 = vadd.f32 %v654_v3, %v651_v53  ;;  %v683_v29 = vadd.f32 %v678_v58, %v670_v18  ;;  %v1239_v3 = vstv %s2571_s28  ;;  %s2657_s28 = sld [smem:[#allocation6 + $0x2b]] }
 0x1a5   : > { %1103 = vrot.lane.b32.xlu1 %v1098_v60, %s2037_s26  ;;  %1116 = vrot.lane.b32.xlu0 %v1112_v61, %s2038_s30  ;;  %v1226_v61 = vmul.f32 %v1224_v42, %v2588_v52 }
 0x1a6   : > { %v671_v28 = vadd.f32 %v667_v54, %v656_v4  ;;  %v1240_v4 = vmul.f32 %v1239_v3, %v2568_v31 }
 0x1a7   : > { %v680_v47 = vpop.permute.xlu1 %679  ;;  %v693_v21 = vpop.permute.xlu0 %692 }
 0x1a8   : > { %v698_v33 = vadd.f32 %v693_v21, %v683_v29  ;;  %v684_v38 = vadd.f32 %v680_v47, %v671_v28  ;;  %v1252_v21 = vstv %s2582_s29  ;;  %s2664_s29 = sld [smem:[#allocation6 + $0x5c]] }
 0x1a9   : > { %1118 = vrot.lane.b32.xlu1 %v1113_v0, %s2038_s30  ;;  %1129 = vrot.lane.b32.xlu0 %v1125_v8, %s2038_s30 }
 0x1ab   : > { %v695_v2 = vpop.permute.xlu1 %694  ;;  %v706_v25 = vpop.permute.xlu0 %705 }
 0x1ac   : > { %v711_v39 = vadd.f32 %v706_v25, %v698_v33  ;;  %v699_v43 = vadd.f32 %v695_v2, %v684_v38  ;;  %v1241_v25 = vmul.f32 %v1239_v3, %v2577_v40 }
 0x1ad   : > { %1131 = vrot.lane.b32.xlu1 %v1126_v7, %s2038_s30  ;;  %1144 = vrot.lane.b32.xlu0 %v1140_v9, %s2039_s19  ;;  %v1253_v7 = vmul.f32 %v1252_v21, %v2579_v41 }
 0x1af   : > { %v708_v55 = vpop.permute.xlu1 %707  ;;  %v721_v12 = vpop.permute.xlu0 %720 }
 0x1b0   : > { %v726_v44 = vadd.f32 %v721_v12, %v711_v39  ;;  %v712_v50 = vadd.f32 %v708_v55, %v699_v43  ;;  %v1267_v55 = vstv %s2591_s17  ;;  %v831_v12 = vstv %s2593_s23  ;;  %s2673_s17 = sld [smem:[#allocation6 + $0x2c]] }
 0x1b1   : > { %1146 = vrot.lane.b32.xlu1 %v1141_v26, %s2039_s19  ;;  %1157 = vrot.lane.b32.xlu0 %v1153_v13, %s2039_s19  ;;  %v832_v18 = vmul.f32 %v831_v12, %v2372_v59  ;;  %v1269_v33 = vmul.f32 %v1267_v55, %v2577_v40  ;;  %s2684_s23 = sld [smem:[#allocation6 + $0x5d]] }
 0x1b3   : > { %v723_v15 = vpop.permute.xlu1 %722  ;;  %v734_v16 = vpop.permute.xlu0 %733 }
 0x1b4   : > { %v739_v51 = vadd.f32 %v734_v16, %v726_v44  ;;  %v727_v53 = vadd.f32 %v723_v15, %v712_v50  ;;  %v836_v15 = vstv %s2599_s3  ;;  %s2693_s3 = sld [smem:[#allocation6 + $0x2d]] }
 0x1b5   : > { %1159 = vrot.lane.b32.xlu1 %v1154_v30, %s2039_s19  ;;  %1172 = vrot.lane.b32.xlu0 %v1168_v17, %s2040_s4  ;;  %v1254_v30 = vmul.f32 %v1252_v21, %v2588_v52  ;;  %v1268_v17 = vmul.f32 %v1267_v55, %v2568_v31 }
 0x1b7   : > { %v736_v22 = vpop.permute.xlu1 %735  ;;  %v749_v23 = vpop.permute.xlu0 %748 }
 0x1b8   : > { %v754_v54 = vadd.f32 %v749_v23, %v739_v51  ;;  %v740_v62 = vadd.f32 %v736_v22, %v727_v53  ;;  %v1280_v23 = vstv %s2602_s18  ;;  %s2697_s18 = sld [smem:[#allocation6 + $0x1c]] }
 0x1b9   : > { %1174 = vrot.lane.b32.xlu1 %v1169_v24, %s2040_s4  ;;  %1185 = vrot.lane.b32.xlu0 %v1181_v27, %s2040_s4  ;;  %v837_v27 = vmul.f32 %v836_v15, %v2384_v10  ;;  %v1281_v59 = vmul.f32 %v1280_v23, %v2579_v41  ;;  %v838_v10 = vmul.f32 %v836_v15, %v2394_v20 }
 0x1ba   : > { %v1282_v44 = vmul.f32 %v1280_v23, %v2588_v52 }
 0x1bb   : > { %v751_v34 = vpop.permute.xlu1 %750  ;;  %v762_v35 = vpop.permute.xlu0 %761 }
 0x1bc   : > { %v767_v47 = vadd.f32 %v762_v35, %v754_v54  ;;  %v755_v0 = vadd.f32 %v751_v34, %v740_v62  ;;  %v833_v34 = vmul.f32 %v831_v12, %v2382_v6 }
 0x1bd   : > { %1187 = vrot.lane.b32.xlu1 %v1182_v36, %s2040_s4  ;;  %1216 = vrot.lane.b32.xlu0 %v1212_v37, %s2035_s7  ;;  %v1295_v37 = vstv %s2609_s22  ;;  %s2701_s22 = sld [smem:[#allocation6 + $0x4d]] }
 0x1be   : > { %v1296_v6 = vmul.f32 %v1295_v37, %v2568_v31  ;;  %v1297_v51 = vmul.f32 %v1295_v37, %v2577_v40  ;;  %v1408_v37 = vstv %s2664_s29  ;;  %s1808_s29 = sshll.u32 %s2018_s12, 8 }
 0x1bf   : > { %v764_v46 = vpop.permute.xlu1 %763  ;;  %v777_v48 = vpop.permute.xlu0 %776 }
 0x1c0   : > { %v782_v8 = vadd.f32 %v777_v48, %v767_v47  ;;  %v768_v9 = vadd.f32 %v764_v46, %v755_v0  ;;  %v1336_v0 = vstv %s2636_s6  ;;  %s2730_s6 = sld [smem:[#allocation6 + $0x2f]] }
 0x1c1   : > { %1218 = vrot.lane.b32.xlu1 %v1213_v63, %s2035_s7  ;;  %1229 = vrot.lane.b32.xlu0 %v1225_v49, %s2035_s7  ;;  %v1308_v63 = vstv %s2619_s24  ;;  %s2704_s24 = sld [smem:[#allocation6 + $0x5e]] }
 0x1c2   : > { %v1309_v3 = vmul.f32 %v1308_v63, %v2579_v41 }
 0x1c3   : > { %v779_v58 = vpop.permute.xlu1 %778  ;;  %v790_v60 = vpop.permute.xlu0 %789 }
 0x1c4   : > { %v795_v11 = vadd.f32 %v790_v60, %v782_v8  ;;  %v783_v26 = vadd.f32 %v779_v58, %v768_v9  ;;  %v1323_v58 = vstv %s2628_s5  ;;  %s2711_s5 = sld [smem:[#allocation6 + $0x2e]] }
 0x1c5   : > { %1231 = vrot.lane.b32.xlu1 %v1226_v61, %s2035_s7  ;;  %1244 = vrot.lane.b32.xlu0 %v1240_v4, %s2036_s27  ;;  %v1310_v4 = vmul.f32 %v1308_v63, %v2588_v52  ;;  %v1324_v62 = vmul.f32 %v1323_v58, %v2568_v31 }
 0x1c7   : > { %v792_v1 = vpop.permute.xlu1 %791  ;;  %v805_v2 = vpop.permute.xlu0 %804 }
 0x1c8   : > { %v810_v13 = vadd.f32 %v805_v2, %v795_v11  ;;  %v796_v19 = vadd.f32 %v792_v1, %v783_v26  ;;  %v1325_v2 = vmul.f32 %v1323_v58, %v2577_v40  ;;  %v1351_v11 = vstv %s2643_s8  ;;  %s1798_s8 = sld [smem:[#allocation6 + $0x30]] }
 0x1c9   : > { %1246 = vrot.lane.b32.xlu1 %v1241_v25, %s2036_s27  ;;  %1257 = vrot.lane.b32.xlu0 %v1253_v7, %s2036_s27  ;;  %v1337_v25 = vmul.f32 %v1336_v0, %v2579_v41  ;;  %v1338_v26 = vmul.f32 %v1336_v0, %v2588_v52  ;;  %v1020_v0 = vstv %s2701_s22  ;;  %s2777_s22 = scalar_lea.hbm %s2830_s2, %s1808_s29 }
 0x1cb   : > { %v807_v14 = vpop.permute.xlu1 %806  ;;  %v818_v16 = vpop.permute.xlu0 %817 }
 0x1cc   : > { %v823_v22 = vadd.f32 %v818_v16, %v810_v13  ;;  %v811_v24 = vadd.f32 %v807_v14, %v796_v19  ;;  %v1352_v13 = vmul.f32 %v1351_v11, %v2568_v31  ;;  %v1364_v16 = vstv %s2650_s16  ;;  %s1787_s16 = sld [smem:[#allocation6 + $0x5b]] }
 0x1cd   : > { %1259 = vrot.lane.b32.xlu1 %v1254_v30, %s2036_s27  ;;  %1272 = vrot.lane.b32.xlu0 %v1268_v17, %s2037_s26  ;;  %v1365_v19 = vmul.f32 %v1364_v16, %v2579_v41 }
 0x1ce   : > { %v834_v28 = vadd.f32 %v832_v18, %v823_v22  ;;  %v1353_v18 = vmul.f32 %v1351_v11, %v2577_v40 }
 0x1cf   : > { %v820_v29 = vpop.permute.xlu1 %819  ;;  %v849_v32 = vpop.permute.xlu0 %848 }
 0x1d0   : > { %v839_v35 = vadd.f32 %v837_v27, %v834_v28  ;;  %v824_v36 = vadd.f32 %v820_v29, %v811_v24  ;;  %v2670_v24 = vld [vmem:[#allocation4 + $0x6] sm:$0xff]  ;;  %v1395_v27 = vstv %s2657_s28  ;;  %s1696_s28 = sshll.u32 %s2160_s0, 4 }
 0x1d1   : > { %1274 = vrot.lane.b32.xlu1 %v1269_v33, %s2037_s26  ;;  %1285 = vrot.lane.b32.xlu0 %v1281_v59, %s2037_s26  ;;  %v1396_v33 = vmul.f32 %v1395_v27, %v2670_v24 }
 0x1d2   : > { %v835_v38 = vadd.f32 %v833_v34, %v824_v36  ;;  %v854_v39 = vadd.f32 %v849_v32, %v839_v35  ;;  %v1366_v32 = vmul.f32 %v1364_v16, %v2588_v52  ;;  %v2679_v35 = vld [vmem:[#allocation4 + $0xe] sm:$0xff]  ;;  %v2681_v36 = vld [vmem:[#allocation5 + $0x6] sm:$0xff] }
 0x1d3   : > { %v851_v42 = vpop.permute.xlu1 %850  ;;  %v862_v43 = vpop.permute.xlu0 %861 }
 0x1d4   : > { %v840_v46 = vadd.f32 %v838_v10, %v835_v38  ;;  %v867_v48 = vadd.f32 %v862_v43, %v854_v39  ;;  %v1397_v39 = vmul.f32 %v1395_v27, %v2679_v35 }
 0x1d5   : > { %1287 = vrot.lane.b32.xlu1 %v1282_v44, %s2037_s26  ;;  %1300 = vrot.lane.b32.xlu0 %v1296_v6, %s2038_s30  ;;  %v2690_v6 = vld [vmem:[#allocation5 + $0xe] sm:$0xff] }
 0x1d6   : > { %v855_v49 = vadd.f32 %v851_v42, %v840_v46  ;;  %v1409_v42 = vmul.f32 %v1408_v37, %v2681_v36  ;;  %v1423_v46 = vstv %s2673_s17  ;;  %s190_s17 = scalar_lea.vmem [#allocation11], %s1696_s28 }
 0x1d7   : > { %v864_v20 = vpop.permute.xlu1 %863  ;;  %v877_v50 = vpop.permute.xlu0 %876  ;;  %v1425_v58 = vmul.f32 %v1423_v46, %v2679_v35 }
 0x1d8   : > { %v868_v53 = vadd.f32 %v864_v20, %v855_v49  ;;  %v882_v54 = vadd.f32 %v877_v50, %v867_v48  ;;  %v1410_v49 = vmul.f32 %v1408_v37, %v2690_v6  ;;  %v1424_v20 = vmul.f32 %v1423_v46, %v2670_v24 }
 0x1d9   : > { %1302 = vrot.lane.b32.xlu1 %v1297_v51, %s2038_s30  ;;  %1313 = vrot.lane.b32.xlu0 %v1309_v3, %s2038_s30  ;;  %v1436_v3 = vstv %s2684_s23  ;;  %s1589_s23 = sshll.u32 %s190_s17, 4  ;;  %s2779_s23 = int_to_ptr.vmem [resolvable:$true] %s1589_s23 }
 0x1da   : > { %s1942_s12 = scalar_lea.vmem %s2779_s23, 256 }
 0x1db   : > { %v879_v60 = vpop.permute.xlu1 %878  ;;  %v890_v61 = vpop.permute.xlu0 %889  ;;  %p1943_p3 = scmp.ne.s32.totalorder %s2779_s23, %s1942_s12 }
 0x1dc   : > { %v883_v47 = vadd.f32 %v879_v60, %v868_v53  ;;  %v895_v21 = vadd.f32 %v890_v61, %v882_v54  ;;  %v1437_v60 = vmul.f32 %v1436_v3, %v2681_v36 }
 0x1dd   : > { %1315 = vrot.lane.b32.xlu1 %v1310_v4, %s2038_s30  ;;  %1328 = vrot.lane.b32.xlu0 %v1324_v62, %s2039_s19  ;;  %v1451_v4 = vstv %s2693_s3  ;;  %v1015_v62 = vstv %s2697_s18  ;;  %p1944_p7 = pnand %p1943_p3, %p2107_p8 }
 0x1de   : > { %v1017_v16 = vmul.f32 %v1015_v62, %v2481_v56 }
 0x1df   : > { %v892_v8 = vpop.permute.xlu1 %891  ;;  %v905_v1 = vpop.permute.xlu0 %904  ;;  %p1945_p9 = pneg %p1944_p7 }
 0x1e0   : > { %v896_v7 = vadd.f32 %v892_v8, %v883_v47  ;;  %v910_v9 = vadd.f32 %v905_v1, %v895_v21  ;;  %v1438_v1 = vmul.f32 %v1436_v3, %v2690_v6 }
 0x1e1   : > { %1330 = vrot.lane.b32.xlu1 %v1325_v2, %s2039_s19  ;;  %1341 = vrot.lane.b32.xlu0 %v1337_v25, %s2039_s19  ;;  %v1452_v2 = vmul.f32 %v1451_v4, %v2670_v24  ;;  %v1016_v25 = vmul.f32 %v1015_v62, %v2472_v45 }
 0x1e3   : > { %v907_v55 = vpop.permute.xlu1 %906  ;;  %v918_v12 = vpop.permute.xlu0 %917 }
 0x1e4   : > { %v911_v14 = vadd.f32 %v907_v55, %v896_v7  ;;  %v923_v15 = vadd.f32 %v918_v12, %v910_v9  ;;  %v1464_v9 = vstv %s2704_s24  ;;  %v1021_v55 = vmul.f32 %v1020_v0, %v2483_v57  ;;  %s1576_s24 = scalar_lea.sflag [#allocation8], %s2160_s0 }
 0x1e5   : > { %1343 = vrot.lane.b32.xlu1 %v1338_v26, %s2039_s19  ;;  %1356 = vrot.lane.b32.xlu0 %v1352_v13, %s2040_s4  ;;  %v1465_v45 = vmul.f32 %v1464_v9, %v2681_v36  ;;  %v1022_v57 = vmul.f32 %v1020_v0, %v2492_v5 }
 0x1e7   : > { %v920_v30 = vpop.permute.xlu1 %919  ;;  %v933_v17 = vpop.permute.xlu0 %932 }
 0x1e8   : > { %v924_v22 = vadd.f32 %v920_v30, %v911_v14  ;;  %v938_v23 = vadd.f32 %v933_v17, %v923_v15  ;;  %v1453_v14 = vmul.f32 %v1451_v4, %v2679_v35  ;;  %v1479_v17 = vstv %s2711_s5  ;;  %s2041_s5 = smov [#allocation11]  }
 0x1e9   : > { %1358 = vrot.lane.b32.xlu1 %v1353_v18, %s2040_s4  ;;  %1369 = vrot.lane.b32.xlu0 %v1365_v19, %s2040_s4  ;;  %v1480_v27 = vmul.f32 %v1479_v17, %v2670_v24 }
 0x1eb   : > { %v935_v28 = vpop.permute.xlu1 %934  ;;  %v946_v29 = vpop.permute.xlu0 %945 }
 0x1ec   : > { %v939_v59 = vadd.f32 %v935_v28, %v924_v22  ;;  %v951_v34 = vadd.f32 %v946_v29, %v938_v23  ;;  %v1466_v23 = vmul.f32 %v1464_v9, %v2690_v6 }
 0x1ed   : > { %1371 = vrot.lane.b32.xlu1 %v1366_v32, %s2040_s4  ;;  %1400 = vrot.lane.b32.xlu0 %v1396_v33, %s2035_s7  ;;  %v1481_v33 = vmul.f32 %v1479_v17, %v2679_v35 }
 0x1ef   : > { %v948_v10 = vpop.permute.xlu1 %947  ;;  %v961_v38 = vpop.permute.xlu0 %960 }
 0x1f0   : > { %v952_v43 = vadd.f32 %v948_v10, %v939_v59  ;;  %v966_v44 = vadd.f32 %v961_v38, %v951_v34  ;;  %v1507_v59 = vstv %s2730_s6 }
 0x1f1   : > { %1402 = vrot.lane.b32.xlu1 %v1397_v39, %s2035_s7  ;;  %1413 = vrot.lane.b32.xlu0 %v1409_v42, %s2035_s7  ;;  %v1508_v38 = vmul.f32 %v1507_v59, %v2670_v24 }
 0x1f3   : > { %v963_v48 = vpop.permute.xlu1 %962  ;;  %v974_v63 = vpop.permute.xlu0 %973 }
 0x1f4   : > { %v967_v50 = vadd.f32 %v963_v48, %v952_v43  ;;  %v979_v51 = vadd.f32 %v974_v63, %v966_v44  ;;  %v1509_v44 = vmul.f32 %v1507_v59, %v2679_v35  ;;  %v1535_v48 = vstv %s1798_s8 }
 0x1f5   : > { %1415 = vrot.lane.b32.xlu1 %v1410_v49, %s2035_s7  ;;  %1428 = vrot.lane.b32.xlu0 %v1424_v20, %s2036_s27  ;;  %s2721_s7 = sld [smem:[#allocation6 + $0x5f]] }
 0x1f7   : > { %v976_v53 = vpop.permute.xlu1 %975  ;;  %v989_v54 = vpop.permute.xlu0 %988 }
 0x1f8   : > { %v980_v61 = vadd.f32 %v976_v53, %v967_v50  ;;  %v994_v47 = vadd.f32 %v989_v54, %v979_v51  ;;  %v1536_v50 = vmul.f32 %v1535_v48, %v2670_v24 }
 0x1f9   : > { %1430 = vrot.lane.b32.xlu1 %v1425_v58, %s2036_s27  ;;  %1441 = vrot.lane.b32.xlu0 %v1437_v60, %s2036_s27  ;;  %v1537_v58 = vmul.f32 %v1535_v48, %v2679_v35 }
 0x1fb   : > { %v991_v21 = vpop.permute.xlu1 %990  ;;  %v1002_v8 = vpop.permute.xlu0 %1001  ;;  %v1492_v56 = vstv %s2721_s7  ;;  %s1946_s7 = sshll.u32 %s2041_s5, 4  ;;  %s1947_s7 = int_to_ptr.vmem [resolvable:$false] %s1946_s7 }
 0x1fc   : > { %v1007_v7 = vadd.f32 %v1002_v8, %v994_v47  ;;  %v995_v11 = vadd.f32 %v991_v21, %v980_v61  ;;  %v1493_v5 = vmul.f32 %v1492_v56, %v2681_v36  ;;  %v1494_v10 = vmul.f32 %v1492_v56, %v2690_v6  ;;  %s1948_s6 = scalar_lea.vmem %s1947_s7, 512  ;;  %p1949_p12 = scmp.lt.s32.totalorder %s2779_s23, %s1947_s7 }
 0x1fd   : > { %1443 = vrot.lane.b32.xlu1 %v1438_v1, %s2036_s27  ;;  %1456 = vrot.lane.b32.xlu0 %v1452_v2, %s2037_s26  ;;  %s1797_s27 = sld [smem:[#allocation6 + $0x60]]  ;;  %p1950_p13 = scmp.lt.s32.totalorder %s1948_s6, %s1942_s12 }
 0x1fe   : > { %v1018_v12 = vadd.f32 %v1016_v25, %v1007_v7 }
 0x1ff   : > { %v1004_v26 = vpop.permute.xlu1 %1003  ;;  %v1033_v13 = vpop.permute.xlu0 %1032  ;;  %p1951_p2 = por %p1950_p13, %p1949_p12 }
 0x200   : > { %v1023_v15 = vadd.f32 %v1021_v55, %v1018_v12  ;;  %v1008_v30 = vadd.f32 %v1004_v26, %v995_v11 }
 0x201   : > { %1458 = vrot.lane.b32.xlu1 %v1453_v14, %s2037_s26  ;;  %1469 = vrot.lane.b32.xlu0 %v1465_v45, %s2037_s26  ;;  %p1952_p5 = pnand %p1951_p2, %p1945_p9 }
 0x202   : > { %v1019_v18 = vadd.f32 %v1017_v16, %v1008_v30  ;;  %v1038_v51 = vadd.f32 %v1033_v13, %v1023_v15 }
 0x203   : > { %v1035_v19 = vpop.permute.xlu1 %1034  ;;  %v1046_v22 = vpop.permute.xlu0 %1045  ;;  %v1520_v39 = vstv %s1797_s27 }
 0x204   : > { %v1024_v28 = vadd.f32 %v1022_v57, %v1019_v18  ;;  %v1521_v46 = vmul.f32 %v1520_v39, %v2681_v36  ;;  %v1522_v20 = vmul.f32 %v1520_v39, %v2690_v6  ;;  %v1051_v4 = vadd.f32 %v1046_v22, %v1038_v51 }
 0x205   : > { %1471 = vrot.lane.b32.xlu1 %v1466_v23, %s2037_s26  ;;  %1484 = vrot.lane.b32.xlu0 %v1480_v27, %s2038_s30  ;;  %s1799_s26 = sld [smem:[#allocation6 + $0x61]] }
 0x206   : > { %v1039_v61 = vadd.f32 %v1035_v19, %v1024_v28 }
 0x207   : > { %v1048_v29 = vpop.permute.xlu1 %1047  ;;  %v1061_v32 = vpop.permute.xlu0 %1060 }
 0x208   : > { %v1066_v62 = vadd.f32 %v1061_v32, %v1051_v4  ;;  %v1052_v8 = vadd.f32 %v1048_v29, %v1039_v61 }
 0x209   : > { %1486 = vrot.lane.b32.xlu1 %v1481_v33, %s2038_s30  ;;  %1497 = vrot.lane.b32.xlu0 %v1493_v5, %s2038_s30 }
 0x20b   : > { %v1063_v34 = vpop.permute.xlu1 %1062  ;;  %v1074_v37 = vpop.permute.xlu0 %1073  ;;  %v1548_v3 = vstv %s1799_s26 }
 0x20c   : > { %v1549_v60 = vmul.f32 %v1548_v3, %v2681_v36  ;;  %v1550_v0 = vmul.f32 %v1548_v3, %v2690_v6  ;;  %v1079_v1 = vadd.f32 %v1074_v37, %v1066_v62  ;;  %v1067_v2 = vadd.f32 %v1063_v34, %v1052_v8 }
 0x20d   : > { %1499 = vrot.lane.b32.xlu1 %v1494_v10, %s2038_s30  ;;  %1512 = vrot.lane.b32.xlu0 %v1508_v38, %s2039_s19  ;;  %s1772_s30 = sld [smem:[#allocation6 + $0x23]] }
 0x20f   : > { %v1076_v42 = vpop.permute.xlu1 %1075  ;;  %v1089_v43 = vpop.permute.xlu0 %1088 }
 0x210   : > { %v1094_v25 = vadd.f32 %v1089_v43, %v1079_v1  ;;  %v1080_v11 = vadd.f32 %v1076_v42, %v1067_v2 }
 0x211   : > { %1514 = vrot.lane.b32.xlu1 %v1509_v44, %s2039_s19  ;;  %1525 = vrot.lane.b32.xlu0 %v1521_v46, %s2039_s19 }
 0x213   : > { %v1091_v63 = vpop.permute.xlu1 %1090  ;;  %v1102_v49 = vpop.permute.xlu0 %1101  ;;  %v1199_v22 = vstv %s1772_s30 }
 0x214   : > { %v1107_v55 = vadd.f32 %v1102_v49, %v1094_v25  ;;  %v1095_v12 = vadd.f32 %v1091_v63, %v1080_v11  ;;  %v1200_v33 = vmul.f32 %v1199_v22, %v2568_v31  ;;  %v1201_v39 = vmul.f32 %v1199_v22, %v2577_v40 }
 0x215   : > { %1527 = vrot.lane.b32.xlu1 %v1522_v20, %s2039_s19  ;;  %1540 = vrot.lane.b32.xlu0 %v1536_v50, %s2040_s4  ;;  %s1773_s19 = sld [smem:[#allocation6 + $0x54]] }
 0x217   : > { %v1104_v53 = vpop.permute.xlu1 %1103  ;;  %v1117_v54 = vpop.permute.xlu0 %1116 }
 0x218   : > { %v1122_v26 = vadd.f32 %v1117_v54, %v1107_v55  ;;  %v1108_v45 = vadd.f32 %v1104_v53, %v1095_v12 }
 0x219   : > { %1542 = vrot.lane.b32.xlu1 %v1537_v58, %s2040_s4  ;;  %1553 = vrot.lane.b32.xlu0 %v1549_v60, %s2040_s4 }
 0x21b   : > { %v1119_v47 = vpop.permute.xlu1 %1118  ;;  %v1130_v21 = vpop.permute.xlu0 %1129  ;;  %v1204_v29 = vstv %s1773_s19 }
 0x21c   : > { %v1135_v15 = vadd.f32 %v1130_v21, %v1122_v26  ;;  %v1123_v16 = vadd.f32 %v1119_v47, %v1108_v45  ;;  %v1205_v37 = vmul.f32 %v1204_v29, %v2579_v41  ;;  %v1206_v46 = vmul.f32 %v1204_v29, %v2588_v52 }
 0x21d   : > { %1555 = vrot.lane.b32.xlu1 %v1550_v0, %s2040_s4  ;;  %s1786_s4 = sld [smem:[#allocation6 + $0x2a]] }
 0x21f   : > { %v1132_v7 = vpop.permute.xlu1 %1131  ;;  %v1145_v9 = vpop.permute.xlu0 %1144 }
 0x220   : > { %v1150_v30 = vadd.f32 %v1145_v9, %v1135_v15  ;;  %v1136_v18 = vadd.f32 %v1132_v7, %v1123_v16 }
 0x223   : > { %v1147_v13 = vpop.permute.xlu1 %1146  ;;  %v1158_v14 = vpop.permute.xlu0 %1157 }
 0x224   : > { %v1163_v19 = vadd.f32 %v1158_v14, %v1150_v30  ;;  %v1151_v23 = vadd.f32 %v1147_v13, %v1136_v18  ;;  %v1383_v18 = vstv %s1786_s4 }
 0x225   : > { %v1384_v29 = vmul.f32 %v1383_v18, %v2670_v24 }
 0x227   : > { %v1160_v17 = vpop.permute.xlu1 %1159  ;;  %v1173_v57 = vpop.permute.xlu0 %1172 }
 0x228   : > { %v1178_v27 = vadd.f32 %v1173_v57, %v1163_v19  ;;  %v1164_v32 = vadd.f32 %v1160_v17, %v1151_v23 }
 0x22b   : > { %v1175_v28 = vpop.permute.xlu1 %1174  ;;  %v1186_v56 = vpop.permute.xlu0 %1185 }
 0x22c   : > { %v1191_v5 = vadd.f32 %v1186_v56, %v1178_v27  ;;  %v1179_v59 = vadd.f32 %v1175_v28, %v1164_v32  ;;  %v1388_v28 = vstv %s1787_s16 }
 0x22e   : > { %v1202_v34 = vadd.f32 %v1200_v33, %v1191_v5 }
 0x22f   : > { %v1188_v10 = vpop.permute.xlu1 %1187  ;;  %v1217_v38 = vpop.permute.xlu0 %1216 }
 0x230   : > { %v1192_v42 = vadd.f32 %v1188_v10, %v1179_v59  ;;  %v1207_v43 = vadd.f32 %v1205_v37, %v1202_v34  ;;  %v1389_v59 = vmul.f32 %v1388_v28, %v2681_v36  ;;  %v1385_v10 = vmul.f32 %v1383_v18, %v2679_v35 }
 0x232   : > { %v1203_v44 = vadd.f32 %v1201_v39, %v1192_v42  ;;  %v1222_v58 = vadd.f32 %v1217_v38, %v1207_v43  ;;  %v1390_v43 = vmul.f32 %v1388_v28, %v2690_v6 }
 0x233   : > { %v1219_v48 = vpop.permute.xlu1 %1218  ;;  %v1230_v63 = vpop.permute.xlu0 %1229 }
 0x234   : > { %v1208_v49 = vadd.f32 %v1206_v46, %v1203_v44  ;;  %v1235_v4 = vadd.f32 %v1230_v63, %v1222_v58 }
 0x236   : > { %v1223_v40 = vadd.f32 %v1219_v48, %v1208_v49 }
 0x237   : > { %v1232_v20 = vpop.permute.xlu1 %1231  ;;  %v1245_v50 = vpop.permute.xlu0 %1244 }
 0x238   : > { %v1250_v62 = vadd.f32 %v1245_v50, %v1235_v4  ;;  %v1236_v52 = vadd.f32 %v1232_v20, %v1223_v40 }
 0x23b   : > { %v1247_v31 = vpop.permute.xlu1 %1246  ;;  %v1258_v51 = vpop.permute.xlu0 %1257 }
 0x23c   : > { %v1263_v0 = vadd.f32 %v1258_v51, %v1250_v62  ;;  %v1251_v8 = vadd.f32 %v1247_v31, %v1236_v52 }
 0x23f   : > { %v1260_v3 = vpop.permute.xlu1 %1259  ;;  %v1273_v53 = vpop.permute.xlu0 %1272 }
 0x240   : > { %v1278_v1 = vadd.f32 %v1273_v53, %v1263_v0  ;;  %v1264_v7 = vadd.f32 %v1260_v3, %v1251_v8 }
 0x243   : > { %v1275_v54 = vpop.permute.xlu1 %1274  ;;  %v1286_v41 = vpop.permute.xlu0 %1285 }
 0x244   : > { %v1291_v9 = vadd.f32 %v1286_v41, %v1278_v1  ;;  %v1279_v11 = vadd.f32 %v1275_v54, %v1264_v7 }
 0x247   : > { %v1288_v60 = vpop.permute.xlu1 %1287  ;;  %v1301_v61 = vpop.permute.xlu0 %1300 }
 0x248   : > { %v1306_v55 = vadd.f32 %v1301_v61, %v1291_v9  ;;  %v1292_v13 = vadd.f32 %v1288_v60, %v1279_v11 }
 0x24b   : > { %v1303_v47 = vpop.permute.xlu1 %1302  ;;  %v1314_v21 = vpop.permute.xlu0 %1313 }
 0x24c   : > { %v1319_v14 = vadd.f32 %v1314_v21, %v1306_v55  ;;  %v1307_v45 = vadd.f32 %v1303_v47, %v1292_v13 }
 0x24f   : > { %v1316_v2 = vpop.permute.xlu1 %1315  ;;  %v1329_v25 = vpop.permute.xlu0 %1328 }
 0x250   : > { %v1334_v15 = vadd.f32 %v1329_v25, %v1319_v14  ;;  %v1320_v17 = vadd.f32 %v1316_v2, %v1307_v45 }
 0x253   : > { %v1331_v12 = vpop.permute.xlu1 %1330  ;;  %v1342_v26 = vpop.permute.xlu0 %1341 }
 0x254   : > { %v1347_v57 = vadd.f32 %v1342_v26, %v1334_v15  ;;  %v1335_v19 = vadd.f32 %v1331_v12, %v1320_v17 }
 0x257   : > { %v1344_v16 = vpop.permute.xlu1 %1343  ;;  %v1357_v30 = vpop.permute.xlu0 %1356 }
 0x258   : > { %v1362_v22 = vadd.f32 %v1357_v30, %v1347_v57  ;;  %v1348_v56 = vadd.f32 %v1344_v16, %v1335_v19 }
 0x25b   : > { %v1359_v23 = vpop.permute.xlu1 %1358  ;;  %v1370_v27 = vpop.permute.xlu0 %1369 }
 0x25c   : > { %v1375_v32 = vadd.f32 %v1370_v27, %v1362_v22  ;;  %v1363_v33 = vadd.f32 %v1359_v23, %v1348_v56 }
 0x25e   : > { %v1386_v5 = vadd.f32 %v1384_v29, %v1375_v32 }
 0x25f   : > { %v1372_v34 = vpop.permute.xlu1 %1371  ;;  %v1401_v37 = vpop.permute.xlu0 %1400 }
 0x260   : > { %v1376_v38 = vadd.f32 %v1372_v34, %v1363_v33  ;;  %v1391_v39 = vadd.f32 %v1389_v59, %v1386_v5 }
 0x262   : > { %v1387_v42 = vadd.f32 %v1385_v10, %v1376_v38  ;;  %v1406_v3 = vadd.f32 %v1401_v37, %v1391_v39 }
 0x263   : > { %v1403_v44 = vpop.permute.xlu1 %1402  ;;  %v1414_v46 = vpop.permute.xlu0 %1413 }
 0x264   : > { %v1392_v48 = vadd.f32 %v1390_v43, %v1387_v42  ;;  %v1419_v41 = vadd.f32 %v1414_v46, %v1406_v3 }
 0x266   : > { %v1407_v35 = vadd.f32 %v1403_v44, %v1392_v48 }
 0x267   : > { %v1416_v63 = vpop.permute.xlu1 %1415  ;;  %v1429_v49 = vpop.permute.xlu0 %1428 }
 0x268   : > { %v1434_v58 = vadd.f32 %v1429_v49, %v1419_v41  ;;  %v1420_v6 = vadd.f32 %v1416_v63, %v1407_v35 }
 0x26b   : > { %v1431_v24 = vpop.permute.xlu1 %1430  ;;  %v1442_v20 = vpop.permute.xlu0 %1441 }
 0x26c   : > { %v1447_v40 = vadd.f32 %v1442_v20, %v1434_v58  ;;  %v1435_v4 = vadd.f32 %v1431_v24, %v1420_v6 }
 0x26f   : > { %v1444_v50 = vpop.permute.xlu1 %1443  ;;  %v1457_v31 = vpop.permute.xlu0 %1456 }
 0x270   : > { %v1462_v62 = vadd.f32 %v1457_v31, %v1447_v40  ;;  %v1448_v52 = vadd.f32 %v1444_v50, %v1435_v4 }
 0x273   : > { %v1459_v51 = vpop.permute.xlu1 %1458  ;;  %v1470_v36 = vpop.permute.xlu0 %1469 }
 0x274   : > { %v1475_v0 = vadd.f32 %v1470_v36, %v1462_v62  ;;  %v1463_v8 = vadd.f32 %v1459_v51, %v1448_v52 }
 0x277   : > { %v1472_v53 = vpop.permute.xlu1 %1471  ;;  %v1485_v54 = vpop.permute.xlu0 %1484 }
 0x278   : > { %v1490_v1 = vadd.f32 %v1485_v54, %v1475_v0  ;;  %v1476_v7 = vadd.f32 %v1472_v53, %v1463_v8 }
 0x27b   : > { %v1487_v60 = vpop.permute.xlu1 %1486  ;;  %v1498_v61 = vpop.permute.xlu0 %1497 }
 0x27c   : > { %v1503_v9 = vadd.f32 %v1498_v61, %v1490_v1  ;;  %v1491_v11 = vadd.f32 %v1487_v60, %v1476_v7 }
 0x27f   : > { %v1500_v47 = vpop.permute.xlu1 %1499  ;;  %v1513_v21 = vpop.permute.xlu0 %1512 }
 0x280   : > { %v1518_v55 = vadd.f32 %v1513_v21, %v1503_v9  ;;  %v1504_v13 = vadd.f32 %v1500_v47, %v1491_v11 }
 0x283   : > { %v1515_v2 = vpop.permute.xlu1 %1514  ;;  %v1526_v25 = vpop.permute.xlu0 %1525 }
 0x284   : > { %v1531_v14 = vadd.f32 %v1526_v25, %v1518_v55  ;;  %v1519_v45 = vadd.f32 %v1515_v2, %v1504_v13 }
 0x287   : > { %v1528_v12 = vpop.permute.xlu1 %1527  ;;  %v1541_v26 = vpop.permute.xlu0 %1540 }
 0x288   : > { %v1546_v15 = vadd.f32 %v1541_v26, %v1531_v14  ;;  %v1532_v17 = vadd.f32 %v1528_v12, %v1519_v45 }
 0x28b   : > { %v1543_v16 = vpop.permute.xlu1 %1542  ;;  %v1554_v30 = vpop.permute.xlu0 %1553 }
 0x28c   : > { %v1559_v57 = vadd.f32 %v1554_v30, %v1546_v15  ;;  %v1547_v18 = vadd.f32 %v1543_v16, %v1532_v17 }
 0x28e   : > { %v1800_v19 = vmul.f32 -1.442695, %v1559_v57 }
 0x28f   : > { %v1556_v22 = vpop.permute.xlu1 %1555 }
 0x290   : > { %1895 = vpow2.f32 %v1800_v19  ;;  %v1560_v23 = vadd.f32 %v1556_v22, %v1547_v18 }
 0x292   : > { %v1801_v27 = vmul.f32 -1.442695, %v1560_v23 }
 0x294   : > { %1897 = vpow2.f32 %v1801_v27 }
 0x29d   : > { %v1896_v28 = vpop.eup %1895 }
 0x29e   : > { %v1567_v56 = vadd.f32 1.0, %v1896_v28 }
 0x2a0   : > { %1899 = vrcp.f32 %v1567_v56 }
 0x2a1   : > { %v1898_v29 = vpop.eup %1897 }
 0x2a2   : > { %v1568_v32 = vadd.f32 1.0, %v1898_v29 }
 0x2a4   : > { %1901 = vrcp.f32 %v1568_v32 }
 0x2ad   : > { %v1900_v33 = vpop.eup %1899 }
 0x2ae   : > { %1573 = vst.msk [vmem:[%s190_s17] sm:$0xff] %vm196_vm0, %v1900_v33 }
 0x2b1   : > { %v1902_v5 = vpop.eup %1901 }
 0x2b2   : > { %1574 = vst.msk [vmem:[%s190_s17 + $0x8] sm:$0xff] %vm196_vm0, %v1902_v5 }
 0x2b3   : > { %1955 = shalt.err (!%p1952_p5)
}
 0x2b4   : > { %s1956_s27 = scalar_lea.hbm %s2777_s22, 256  ;;  %s1960_s30 = scalar_lea.hbm %s2830_s2, 512 }
 0x2b5   : > { %p1957_p10 = scmp.ne.s32.totalorder %s2777_s22, %s1956_s27  ;;  %p1961_p0 = scmp.lt.s32.totalorder %s2777_s22, %s2830_s2 }
 0x2b6   : > { %p1962_p4 = scmp.lt.s32.totalorder %s1960_s30, %s1956_s27 }
 0x2b7   : > { %p1958_p11 = pnand %p1957_p10, %p2107_p8 }
 0x2b8   : > { %p1963_p6 = por %p1962_p4, %p1961_p0 }
 0x2b9   : > { %p1959_p1 = pneg %p1958_p11 }
 0x2bb   : > { %p1964_p3 = pnand %p1963_p6, %p1959_p1 }
 0x2bd   : > { %1967 = shalt.err (!%p1964_p3)
}
 0x2be   : > { %s2042_s16 = smov 128   ;;  %s2043_s28 = smov 8  }
 0x2bf   : > { %1815 = dma.vmem_to_hbm [thread:$0]  (%p2107_p8), %s2779_s23, 256, %s2777_s22, %s1576_s24, %s2042_s16, %s2042_s16, %s2043_s28  }
 0x2c0 PF: > { %s1604_s29 = sand.u32 1, %s2006_s9   ;;  %p2839_p7 = scmp.ne.s32.totalorder %s2835_s21, 0 }
 0x2c1   : > { %p2840_p9 = scmp.ge.s32.totalorder %s2026_s14, 2  ;;  %s1605_s17 = scalar_lea.sflag [#allocation8], %s1604_s29 }
 0x2c3   : > { %p1826_p12 = pnand %p2840_p9, %p2839_p7 }
 0x2c5   : > { %p1827_p13 = pneg %p1826_p12 }
 0x2c7   : > { %2001 = dma.done.wait (%p1827_p13), %s1605_s17, 256  }
 0x2c8   : > { %2003 = vsyncadd (%p1827_p13), %s1605_s17, 4294967040  ;;  %s19_s14 = sadd.s32 1, %s2026_s14   ;;  %s2841_s9 = smov %s2010_s10 }
 0x2c9   : > { %p16_p2 = scmp.ge.s32.totalorder %s19_s14, 4   ;;  %s2842_s10 = smov %s2014_s11 }
 0x2ca   : > { %s2843_s11 = smov %s2147_s15  ;;  %s2844_s12 = smov %s2022_s13 }
 0x2cb   : > { %s2845_s13 = smov %s2847_s25  ;;  %18 = sbr.rel (!%p16_p2) target bundleno = 9 (0x9), region = 89 }
 0x2d0   :  { %1610 = vsyncpa [#allocation7], 1 }
 0x2d1   :  { %1612 = vsyncpa [#allocation7 + $0x1], 1 }
 0x2d2   :  { %1613 = vsyncpa [#allocation8], 1 }
 0x2d3   :  { %1615 = vsyncpa [#allocation8 + $0x1], 1 }
 0x2d4   :  { %1616 = vsyncpa [#allocation9], 1 }
 0x2d5   :  { %1618 = vsyncpa [#allocation9 + $0x1], 1 }

</bundles_post_ra>
